<compile_context>
chip_gen: v7x
topology: tpu7x:2x2x1
jax: 0.10.0
libtpu: 0.0.40
codegen_flags: <defaults>
</compile_context>

<pallas_src>
import functools

import jax
import jax.numpy as jnp
from jax.experimental import pallas as pl
from jax.experimental.pallas import tpu as pltpu

HIDDEN = 768
LANE = 128
NEG_INF = -1e30


def _round_up(n, m):
    return ((n + m - 1) // m) * m


def _mlp_probe_kernel(x_ref, w1_ref, b1_ref, w2_ref, b2_ref, o_ref):
    # Layer 1: Linear(768, 768) + ReLU. bf16 MXU matmul, f32 accumulation,
    # bias/ReLU in f32 on the VPU.
    h = jnp.dot(x_ref[...], w1_ref[...], preferred_element_type=jnp.float32)
    h = jnp.maximum(h + b1_ref[...], 0.0)

    # Layer 2: Linear(768, L_pad). Cast activations to bf16 for the MXU,
    # accumulate in f32. Padded label columns carry a -1e30 bias.
    logits = jnp.dot(h.astype(jnp.bfloat16), w2_ref[...],
                     preferred_element_type=jnp.float32)
    logits = logits + b2_ref[...]

    # Softmax over the (padded) label dimension, all f32.
    m = jnp.max(logits, axis=-1, keepdims=True)
    e = jnp.exp(logits - m)                    # padded columns underflow to 0
    denom = jnp.sum(e, axis=-1, keepdims=True)
    o_ref[...] = (e * pl.reciprocal(denom, approx=True)).astype(o_ref.dtype)


@functools.partial(jax.jit, static_argnames=("block_b",))
def mlp_probe(x, w1_t, b1, w2_t, b2, *, block_b=256):
    """Forward pass of MLPProbe.

    x:    [B, 768]
    w1_t: [768, 768]  (Linear1 weight transposed, i.e. W1.T)
    b1:   [768] or [1, 768]
    w2_t: [768, L]    (Linear2 weight transposed)
    b2:   [L] or [1, L]
    Returns softmax probabilities [B, L] in float32.
    """
    B, H = x.shape
    assert H == HIDDEN
    L = w2_t.shape[1]

    b1 = b1.reshape(1, H).astype(jnp.float32)
    b2 = b2.reshape(1, L).astype(jnp.float32)

    # Pad the label dim to a lane-dense multiple of 128. Padded weight columns
    # are zero; padded bias entries are a huge negative so exp() -> 0 and the
    # softmax over the real labels is unchanged.
    L_pad = max(LANE, _round_up(L, LANE))
    if L_pad != L:
        w2_t = jnp.pad(w2_t, ((0, 0), (0, L_pad - L)))
        b2 = jnp.pad(b2, ((0, 0), (0, L_pad - L)), constant_values=NEG_INF)

    # Pad the batch up to a multiple of the batch tile (handles ragged B).
    blk = min(block_b, _round_up(B, 8))
    B_pad = _round_up(B, blk)
    if B_pad != B:
        x = jnp.pad(x, ((0, B_pad - B), (0, 0)))

    # bf16 matmul operands (MXU-native on all generations), f32 everywhere else.
    x_bf = x.astype(jnp.bfloat16)
    w1_bf = w1_t.astype(jnp.bfloat16)
    w2_bf = w2_t.astype(jnp.bfloat16)

    grid = (B_pad // blk,)
    cost = pl.CostEstimate(
        flops=2 * B_pad * H * (H + L_pad),
        transcendentals=B_pad * L_pad,
        bytes_accessed=(x_bf.size * 2 + w1_bf.size * 2 + w2_bf.size * 2
                        + b1.size * 4 + b2.size * 4 + B_pad * L_pad * 4),
    )

    out = pl.pallas_call(
        _mlp_probe_kernel,
        out_shape=jax.ShapeDtypeStruct((B_pad, L_pad), jnp.float32),
        grid_spec=pltpu.PrefetchScalarGridSpec(
            num_scalar_prefetch=0,
            grid=grid,
            in_specs=[
                pl.BlockSpec((blk, H), lambda i: (i, 0)),     # x tile (pipelined)
                pl.BlockSpec((H, H), lambda i: (0, 0)),       # W1^T (VMEM resident)
                pl.BlockSpec((1, H), lambda i: (0, 0)),       # b1
                pl.BlockSpec((H, L_pad), lambda i: (0, 0)),   # W2^T (VMEM resident)
                pl.BlockSpec((1, L_pad), lambda i: (0, 0)),   # b2
            ],
            out_specs=pl.BlockSpec((blk, L_pad), lambda i: (i, 0)),
        ),
        compiler_params=pltpu.CompilerParams(
            dimension_semantics=("parallel",),   # batch axis shards across TCs on v7x
        ),
        cost_estimate=cost,
    )(x_bf, w1_bf, b1, w2_bf, b2)

    return out[:B, :L]


def _reference(x, w1_t, b1, w2_t, b2):
    h = jnp.maximum(x @ w1_t + b1, 0.0)
    logits = h @ w2_t + b2
    return jax.nn.softmax(logits, axis=1)


if __name__ == "__main__":
    num_labels = 4
    batch = 8

    key = jax.random.PRNGKey(0)
    kx, kw1, kb1, kw2, kb2 = jax.random.split(key, 5)

    # Deterministic synthetic parameters (shapes from MLPProbe.__init__).
    x = jax.random.normal(kx, (batch, HIDDEN), dtype=jnp.float32)
    # PyTorch Linear weight is [out, in]; pass transposed [in, out] for x @ W.
    w1_t = jax.random.normal(kw1, (HIDDEN, HIDDEN), dtype=jnp.float32) * 0.02
    b1 = jax.random.normal(kb1, (HIDDEN,), dtype=jnp.float32) * 0.02
    w2_t = jax.random.normal(kw2, (HIDDEN, num_labels), dtype=jnp.float32) * 0.02
    b2 = jax.random.normal(kb2, (num_labels,), dtype=jnp.float32) * 0.02

    out = mlp_probe(x, w1_t, b1, w2_t, b2)
    out = jax.block_until_ready(out)

    ref = _reference(x, w1_t, b1, w2_t, b2)
    assert out.shape == (batch, num_labels)
    # bf16 matmuls (f32 accumulation) + approx reciprocal -> loosened tolerance.
    assert jnp.allclose(out, ref, atol=1e-2, rtol=1e-2), "mismatch vs f32 reference"
    assert jnp.allclose(jnp.sum(out, axis=1), 1.0, atol=1e-2), "softmax rows must sum to 1"

    print("KERNEL_OK")
</pallas_src>

<mosaic_0001>
module attributes {stable_mosaic.version = 11 : i64} {
  func.func @_mlp_probe_kernel(%arg0: i32, %arg1: memref<8x768xbf16, #tpu.memory_space<vmem>>, %arg2: memref<768x768xbf16, #tpu.memory_space<vmem>>, %arg3: memref<1x768xf32, #tpu.memory_space<vmem>>, %arg4: memref<768x128xbf16, #tpu.memory_space<vmem>>, %arg5: memref<1x128xf32, #tpu.memory_space<vmem>>, %arg6: memref<8x128xf32, #tpu.memory_space<vmem>>) attributes {dimension_semantics = [#tpu.dimension_semantics<parallel>], iteration_bounds = array<i64: 1>, scalar_prefetch = 0 : i64, scratch_operands = 0 : i64, tpu.core_type = #tpu.core_type<tc>, window_params = [{transform_indices = @transform_0, window_bounds = array<i64: 8, 768>}, {pipeline_mode = #tpu.pipeline_mode<synchronous>, transform_indices = @transform_1, window_bounds = array<i64: 768, 768>}, {pipeline_mode = #tpu.pipeline_mode<synchronous>, transform_indices = @transform_2, window_bounds = array<i64: 1, 768>}, {pipeline_mode = #tpu.pipeline_mode<synchronous>, transform_indices = @transform_3, window_bounds = array<i64: 768, 128>}, {pipeline_mode = #tpu.pipeline_mode<synchronous>, transform_indices = @transform_4, window_bounds = array<i64: 1, 128>}, {transform_indices = @transform_5, window_bounds = array<i64: 8, 128>}]} {
    %c0 = arith.constant 0 : index
    %c0_0 = arith.constant 0 : index
    %0 = vector.load %arg1[%c0, %c0_0] : memref<8x768xbf16, #tpu.memory_space<vmem>>, vector<8x768xbf16>
    %c0_1 = arith.constant 0 : index
    %c0_2 = arith.constant 0 : index
    %1 = vector.load %arg2[%c0_1, %c0_2] : memref<768x768xbf16, #tpu.memory_space<vmem>>, vector<768x768xbf16>
    %cst = arith.constant dense<0.000000e+00> : vector<8x768xf32>
    %2 = tpu.matmul %0, %1, %cst {dimension_numbers = #tpu.dot_dimension_numbers<[1], [0], [0], [1], [0, 0, 1, 1], [], []>} : vector<8x768xbf16>, vector<768x768xbf16>, vector<8x768xf32> -> vector<8x768xf32>
    %c0_3 = arith.constant 0 : index
    %c0_4 = arith.constant 0 : index
    %3 = vector.load %arg3[%c0_3, %c0_4] : memref<1x768xf32, #tpu.memory_space<vmem>>, vector<1x768xf32>
    %4 = vector.broadcast %3 : vector<1x768xf32> to vector<8x768xf32>
    %5 = arith.addf %2, %4 : vector<8x768xf32>
    %cst_5 = arith.constant 0.000000e+00 : f32
    %6 = vector.broadcast %cst_5 : f32 to vector<8x768xf32>
    %7 = arith.maximumf %5, %6 : vector<8x768xf32>
    %8 = arith.truncf %7 : vector<8x768xf32> to vector<8x768xbf16>
    %c0_6 = arith.constant 0 : index
    %c0_7 = arith.constant 0 : index
    %9 = vector.load %arg4[%c0_6, %c0_7] : memref<768x128xbf16, #tpu.memory_space<vmem>>, vector<768x128xbf16>
    %cst_8 = arith.constant dense<0.000000e+00> : vector<8x128xf32>
    %10 = tpu.matmul %8, %9, %cst_8 {dimension_numbers = #tpu.dot_dimension_numbers<[1], [0], [0], [1], [0, 0, 1, 1], [], []>} : vector<8x768xbf16>, vector<768x128xbf16>, vector<8x128xf32> -> vector<8x128xf32>
    %c0_9 = arith.constant 0 : index
    %c0_10 = arith.constant 0 : index
    %11 = vector.load %arg5[%c0_9, %c0_10] : memref<1x128xf32, #tpu.memory_space<vmem>>, vector<1x128xf32>
    %12 = vector.broadcast %11 : vector<1x128xf32> to vector<8x128xf32>
    %13 = arith.addf %10, %12 : vector<8x128xf32>
    %cst_11 = arith.constant dense<0xFF800000> : vector<8xf32>
    %14 = vector.multi_reduction <maximumf>, %13, %cst_11 [1] : vector<8x128xf32> to vector<8xf32>
    %15 = vector.shape_cast %14 : vector<8xf32> to vector<8x1xf32>
    %16 = vector.broadcast %15 : vector<8x1xf32> to vector<8x128xf32>
    %17 = arith.subf %13, %16 : vector<8x128xf32>
    %18 = math.exp %17 : vector<8x128xf32>
    %cst_12 = arith.constant dense<0.000000e+00> : vector<8xf32>
    %19 = vector.multi_reduction <add>, %18, %cst_12 [1] : vector<8x128xf32> to vector<8xf32>
    %20 = vector.shape_cast %19 : vector<8xf32> to vector<8x1xf32>
    %21 = tpu.reciprocal %20 {approx = true} : vector<8x1xf32> -> vector<8x1xf32>
    %22 = vector.broadcast %21 : vector<8x1xf32> to vector<8x128xf32>
    %23 = arith.mulf %18, %22 : vector<8x128xf32>
    %c0_13 = arith.constant 0 : index
    %c0_14 = arith.constant 0 : index
    %24 = vector.load %arg6[%c0_13, %c0_14] : memref<8x128xf32, #tpu.memory_space<vmem>>, vector<8x128xf32>
    tpu.vector_store %arg6[%c0_13, %c0_14], %23 {strides = array<i32>} : memref<8x128xf32, #tpu.memory_space<vmem>>, vector<8x128xf32>,
    return
  }
  func.func @transform_0(%arg0: i32) -> (i32, i32) {
    %c0_i32 = arith.constant 0 : i32
    %c0_i32_0 = arith.constant 0 : i32
    return %arg0, %c0_i32 : i32, i32
  }
  func.func @transform_1(%arg0: i32) -> (i32, i32) {
    %c0_i32 = arith.constant 0 : i32
    %c0_i32_0 = arith.constant 0 : i32
    %c0_i32_1 = arith.constant 0 : i32
    return %c0_i32, %c0_i32_0 : i32, i32
  }
  func.func @transform_2(%arg0: i32) -> (i32, i32) {
    %c0_i32 = arith.constant 0 : i32
    %c0_i32_0 = arith.constant 0 : i32
    %c0_i32_1 = arith.constant 0 : i32
    return %c0_i32, %c0_i32_0 : i32, i32
  }
  func.func @transform_3(%arg0: i32) -> (i32, i32) {
    %c0_i32 = arith.constant 0 : i32
    %c0_i32_0 = arith.constant 0 : i32
    %c0_i32_1 = arith.constant 0 : i32
    return %c0_i32, %c0_i32_0 : i32, i32
  }
  func.func @transform_4(%arg0: i32) -> (i32, i32) {
    %c0_i32 = arith.constant 0 : i32
    %c0_i32_0 = arith.constant 0 : i32
    %c0_i32_1 = arith.constant 0 : i32
    return %c0_i32, %c0_i32_0 : i32, i32
  }
  func.func @transform_5(%arg0: i32) -> (i32, i32) {
    %c0_i32 = arith.constant 0 : i32
    %c0_i32_0 = arith.constant 0 : i32
    return %arg0, %c0_i32 : i32, i32
  }
}

</mosaic_0001>

<bundles_post_ra>
// kernel: mlp_probe.1
= control target key start
LH: loop header
LB: loop body
LE: loop exit
PB: predicated region body
PF: predicated region fallthrough
CT: control target
= control target key end

     0   :  { %s4752_s1 = inlined_call_operand.vmem [shape: bf16[768,768], index: 1, kind: input, shape index: {}]   ;;  %s4753_s0 = inlined_call_operand.vmem [shape: bf16[8,768], index: 0, kind: input, shape index: {}]   ;;  %s4754_s3 = inlined_call_operand.vmem [shape: bf16[768,128], index: 3, kind: input, shape index: {}]   ;;  %s4755_s2 = inlined_call_operand.vmem [shape: f32[1,768], index: 2, kind: input, shape index: {}]   ;;  %s4756_s4 = inlined_call_operand.vmem [shape: f32[1,128], index: 4, kind: input, shape index: {}]   ;;  %s4757_s5 = inlined_call_operand.vmem [shape: f32[8,128], index: 5, kind: output, shape index: {}]  }
   0x1   :  { %v3148_v0 = vld [vmem:[%s4752_s1 + $0x4] ss:$24 sps:$4 sm:$0xff]   ;;  %v3152_v2 = vld [vmem:[%s4752_s1] ss:$24 sps:$4 sm:$0xff]   ;;  %v3154_v4 = vld [vmem:[%s4752_s1 + $0x34] ss:$24 sps:$4 sm:$0xff]  }
   0x2   :  { %v3150_v1 = vld [vmem:[%s4752_s1 + $0x304] ss:$24 sps:$4 sm:$0xff]   ;;  %1805 = vmatprep.subr.bf16.mxu1 %v3148_v0  ;;  %v3153_v3 = vld [vmem:[%s4752_s1 + $0x300] ss:$24 sps:$4 sm:$0xff]   ;;  %v3156_v5 = vld [vmem:[%s4752_s1 + $0x334] ss:$24 sps:$4 sm:$0xff]  }
   0x3   :  { %1846 = vmatprep.subr.bf16.mxu0 %v3150_v1  ;;  %1806 = vmatpush1.bf16.msra.mxu1 %v3152_v2  ;;  %v3158_v6 = vld [vmem:[%s4752_s1 + $0x30] ss:$24 sps:$4 sm:$0xff]   ;;  %v3160_v8 = vld [vmem:[%s4752_s1 + $0x64] ss:$24 sps:$4 sm:$0xff]   ;;  %v3164_v10 = vld [vmem:[%s4752_s1 + $0x60] ss:$24 sps:$4 sm:$0xff]  }
   0x4   :  { %1847 = vmatpush1.bf16.msra.mxu0 %v3153_v3  ;;  %1807 = vmatprep.subr.bf16.mxu1 %v3154_v4  ;;  %v3159_v7 = vld [vmem:[%s4752_s1 + $0x330] ss:$24 sps:$4 sm:$0xff]   ;;  %v3162_v9 = vld [vmem:[%s4752_s1 + $0x364] ss:$24 sps:$4 sm:$0xff]   ;;  %v3165_v11 = vld [vmem:[%s4752_s1 + $0x360] ss:$24 sps:$4 sm:$0xff]  }
   0x5   :  { %1848 = vmatprep.subr.bf16.mxu0 %v3156_v5  ;;  %v3166_v12 = vld [vmem:[%s4752_s1 + $0x94] ss:$24 sps:$4 sm:$0xff]   ;;  %v3170_v14 = vld [vmem:[%s4752_s1 + $0x90] ss:$24 sps:$4 sm:$0xff]   ;;  %v3172_v16 = vld [vmem:[%s4752_s1 + $0xc4] ss:$24 sps:$4 sm:$0xff]  }
   0x6   :  { %v3168_v13 = vld [vmem:[%s4752_s1 + $0x394] ss:$24 sps:$4 sm:$0xff]   ;;  %v3171_v15 = vld [vmem:[%s4752_s1 + $0x390] ss:$24 sps:$4 sm:$0xff]   ;;  %v3174_v17 = vld [vmem:[%s4752_s1 + $0x3c4] ss:$24 sps:$4 sm:$0xff]  }
   0x7   :  { %1808 = vmatpush1.bf16.msra.mxu1 %v3158_v6  ;;  %v3176_v18 = vld [vmem:[%s4752_s1 + $0xc0] ss:$24 sps:$4 sm:$0xff]   ;;  %v3178_v20 = vld [vmem:[%s4752_s1 + $0xf4] ss:$24 sps:$4 sm:$0xff]   ;;  %v3182_v22 = vld [vmem:[%s4752_s1 + $0xf0] ss:$24 sps:$4 sm:$0xff]  }
   0x8   :  { %1849 = vmatpush1.bf16.msra.mxu0 %v3159_v7  ;;  %1809 = vmatprep.subr.bf16.mxu1 %v3160_v8  ;;  %v3177_v19 = vld [vmem:[%s4752_s1 + $0x3c0] ss:$24 sps:$4 sm:$0xff]   ;;  %v3180_v21 = vld [vmem:[%s4752_s1 + $0x3f4] ss:$24 sps:$4 sm:$0xff]   ;;  %v3183_v23 = vld [vmem:[%s4752_s1 + $0x3f0] ss:$24 sps:$4 sm:$0xff]  }
   0x9   :  { %1850 = vmatprep.subr.bf16.mxu0 %v3162_v9  ;;  %v3184_v24 = vld [vmem:[%s4752_s1 + $0x124] ss:$24 sps:$4 sm:$0xff]   ;;  %v3188_v26 = vld [vmem:[%s4752_s1 + $0x120] ss:$24 sps:$4 sm:$0xff]   ;;  %v3190_v28 = vld [vmem:[%s4752_s1 + $0x154] ss:$24 sps:$4 sm:$0xff]  }
   0xa   :  { %v3186_v25 = vld [vmem:[%s4752_s1 + $0x424] ss:$24 sps:$4 sm:$0xff]   ;;  %v3189_v27 = vld [vmem:[%s4752_s1 + $0x420] ss:$24 sps:$4 sm:$0xff]   ;;  %v3192_v29 = vld [vmem:[%s4752_s1 + $0x454] ss:$24 sps:$4 sm:$0xff]  }
   0xb   :  { %1810 = vmatpush1.bf16.msra.mxu1 %v3164_v10  ;;  %v3194_v30 = vld [vmem:[%s4752_s1 + $0x150] ss:$24 sps:$4 sm:$0xff]   ;;  %v3196_v32 = vld [vmem:[%s4752_s1 + $0x184] ss:$24 sps:$4 sm:$0xff]   ;;  %v3200_v34 = vld [vmem:[%s4752_s1 + $0x180] ss:$24 sps:$4 sm:$0xff]  }
   0xc   :  { %1851 = vmatpush1.bf16.msra.mxu0 %v3165_v11  ;;  %1811 = vmatprep.subr.bf16.mxu1 %v3166_v12  ;;  %v3195_v31 = vld [vmem:[%s4752_s1 + $0x450] ss:$24 sps:$4 sm:$0xff]   ;;  %v3198_v33 = vld [vmem:[%s4752_s1 + $0x484] ss:$24 sps:$4 sm:$0xff]   ;;  %v3201_v35 = vld [vmem:[%s4752_s1 + $0x480] ss:$24 sps:$4 sm:$0xff]  }
   0xd   :  { %1852 = vmatprep.subr.bf16.mxu0 %v3168_v13  ;;  %v3202_v36 = vld [vmem:[%s4752_s1 + $0x1b4] ss:$24 sps:$4 sm:$0xff]   ;;  %v3206_v38 = vld [vmem:[%s4752_s1 + $0x1b0] ss:$24 sps:$4 sm:$0xff]   ;;  %v3208_v40 = vld [vmem:[%s4752_s1 + $0x1e4] ss:$24 sps:$4 sm:$0xff]  }
   0xe   :  { %v3204_v37 = vld [vmem:[%s4752_s1 + $0x4b4] ss:$24 sps:$4 sm:$0xff]   ;;  %v3207_v39 = vld [vmem:[%s4752_s1 + $0x4b0] ss:$24 sps:$4 sm:$0xff]   ;;  %v3210_v41 = vld [vmem:[%s4752_s1 + $0x4e4] ss:$24 sps:$4 sm:$0xff]  }
   0xf   :  { %1812 = vmatpush1.bf16.msra.mxu1 %v3170_v14  ;;  %v3212_v42 = vld [vmem:[%s4752_s1 + $0x1e0] ss:$24 sps:$4 sm:$0xff]   ;;  %v3214_v44 = vld [vmem:[%s4752_s1 + $0x214] ss:$24 sps:$4 sm:$0xff]   ;;  %v3218_v49 = vld [vmem:[%s4752_s1 + $0x210] ss:$24 sps:$4 sm:$0xff]  }
  0x10   :  { %1853 = vmatpush1.bf16.msra.mxu0 %v3171_v15  ;;  %1813 = vmatprep.subr.bf16.mxu1 %v3172_v16  ;;  %v3213_v43 = vld [vmem:[%s4752_s1 + $0x4e0] ss:$24 sps:$4 sm:$0xff]   ;;  %v3216_v45 = vld [vmem:[%s4752_s1 + $0x514] ss:$24 sps:$4 sm:$0xff]   ;;  %v3219_v50 = vld [vmem:[%s4752_s1 + $0x510] ss:$24 sps:$4 sm:$0xff]  }
  0x11   :  { %1854 = vmatprep.subr.bf16.mxu0 %v3174_v17  ;;  %v21_v46 = vld [vmem:[%s4753_s0] sm:$0xff]  ;;  %v22_v48 = vld [vmem:[%s4753_s0 + $0x8] sm:$0xff]  ;;  %v3259_v11 = vld [vmem:[%s4752_s1 + $0x3c] ss:$24 sps:$4 sm:$0xff]  }
  0x12   :  { %v3809_v47 = vcombine.high %v21_v46, %v21_v46  ;;  %v3820_v51 = vcombine.high %v22_v48, %v22_v48  ;;  %v3220_v52 = vld [vmem:[%s4752_s1 + $0x244] ss:$24 sps:$4 sm:$0xff]   ;;  %v3224_v54 = vld [vmem:[%s4752_s1 + $0x240] ss:$24 sps:$4 sm:$0xff]   ;;  %v3226_v56 = vld [vmem:[%s4752_s1 + $0x274] ss:$24 sps:$4 sm:$0xff]   ;;  %v3878_v6 = vcombine.low %v21_v46, %v21_v46  ;;  %v3880_v7 = vcombine.low %v22_v48, %v22_v48 }
  0x13   :  { %1814 = vmatpush1.bf16.msra.mxu1 %v3176_v18  ;;  %v3222_v53 = vld [vmem:[%s4752_s1 + $0x544] ss:$24 sps:$4 sm:$0xff]   ;;  %v3225_v55 = vld [vmem:[%s4752_s1 + $0x540] ss:$24 sps:$4 sm:$0xff]   ;;  %v3228_v57 = vld [vmem:[%s4752_s1 + $0x574] ss:$24 sps:$4 sm:$0xff]  }
  0x14   :  { %1855 = vmatpush1.bf16.msra.mxu0 %v3177_v19  ;;  %1815 = vmatprep.subr.bf16.mxu1 %v3178_v20  ;;  %v3230_v58 = vld [vmem:[%s4752_s1 + $0x270] ss:$24 sps:$4 sm:$0xff]   ;;  %v3232_v60 = vld [vmem:[%s4752_s1 + $0x2a4] ss:$24 sps:$4 sm:$0xff]   ;;  %v3236_v62 = vld [vmem:[%s4752_s1 + $0x2a0] ss:$24 sps:$4 sm:$0xff]  }
  0x15   :  { %1856 = vmatprep.subr.bf16.mxu0 %v3180_v21  ;;  %1837 = vmatprep.mubr.bf16.mxu1 %v3809_v47  ;;  %v3231_v59 = vld [vmem:[%s4752_s1 + $0x570] ss:$24 sps:$4 sm:$0xff]   ;;  %v3234_v61 = vld [vmem:[%s4752_s1 + $0x5a4] ss:$24 sps:$4 sm:$0xff]   ;;  %v3237_v63 = vld [vmem:[%s4752_s1 + $0x5a0] ss:$24 sps:$4 sm:$0xff]  }
  0x16   :  { %1878 = vmatprep.mubr.bf16.mxu0 %v3820_v51  ;;  %v3238_v0 = vld [vmem:[%s4752_s1 + $0x2d4] ss:$24 sps:$4 sm:$0xff]   ;;  %v3242_v2 = vld [vmem:[%s4752_s1 + $0x2d0] ss:$24 sps:$4 sm:$0xff]   ;;  %v3248_v4 = vld [vmem:[%s4752_s1 + $0x604] ss:$24 sps:$4 sm:$0xff]  }
  0x17   :  { %1816 = vmatpush1.bf16.msra.mxu1 %v3182_v22  ;;  %v3240_v1 = vld [vmem:[%s4752_s1 + $0x5d4] ss:$24 sps:$4 sm:$0xff]   ;;  %v3243_v3 = vld [vmem:[%s4752_s1 + $0x5d0] ss:$24 sps:$4 sm:$0xff]   ;;  %v3246_v8 = vld [vmem:[%s4752_s1 + $0x600] ss:$24 sps:$4 sm:$0xff]  }
  0x18   :  { %1857 = vmatpush1.bf16.msra.mxu0 %v3183_v23  ;;  %1817 = vmatprep.subr.bf16.mxu1 %v3184_v24  ;;  %v3251_v5 = vld [vmem:[%s4752_s1 + $0xc] ss:$24 sps:$4 sm:$0xff]   ;;  %v3249_v9 = vld [vmem:[%s4752_s1 + $0x8] ss:$24 sps:$4 sm:$0xff]   ;;  %v3257_v13 = vld [vmem:[%s4752_s1 + $0x38] ss:$24 sps:$4 sm:$0xff]  }
  0x19   :  { %1858 = vmatprep.subr.bf16.mxu0 %v3186_v25  ;;  %v3256_v10 = vld [vmem:[%s4752_s1 + $0x634] ss:$24 sps:$4 sm:$0xff]   ;;  %v3254_v12 = vld [vmem:[%s4752_s1 + $0x630] ss:$24 sps:$4 sm:$0xff]   ;;  %v3262_v14 = vld [vmem:[%s4752_s1 + $0x664] ss:$24 sps:$4 sm:$0xff]  }
  0x1a   :  { %v3265_v15 = vld [vmem:[%s4752_s1 + $0x6c] ss:$24 sps:$4 sm:$0xff]   ;;  %v3260_v16 = vld [vmem:[%s4752_s1 + $0x660] ss:$24 sps:$4 sm:$0xff]   ;;  %v3271_v19 = vld [vmem:[%s4752_s1 + $0x9c] ss:$24 sps:$4 sm:$0xff]  }
  0x1b   :  { %1818 = vmatpush1.bf16.msra.mxu1 %v3188_v26  ;;  %v3263_v17 = vld [vmem:[%s4752_s1 + $0x68] ss:$24 sps:$4 sm:$0xff]   ;;  %v3268_v18 = vld [vmem:[%s4752_s1 + $0x694] ss:$24 sps:$4 sm:$0xff]   ;;  %v3269_v21 = vld [vmem:[%s4752_s1 + $0x98] ss:$24 sps:$4 sm:$0xff]  }
  0x1c   :  { %1859 = vmatpush1.bf16.msra.mxu0 %v3189_v27  ;;  %1819 = vmatprep.subr.bf16.mxu1 %v3190_v28  ;;  %v3266_v20 = vld [vmem:[%s4752_s1 + $0x690] ss:$24 sps:$4 sm:$0xff]   ;;  %v3274_v22 = vld [vmem:[%s4752_s1 + $0x6c4] ss:$24 sps:$4 sm:$0xff]   ;;  %v3272_v24 = vld [vmem:[%s4752_s1 + $0x6c0] ss:$24 sps:$4 sm:$0xff]  }
  0x1d   :  { %1860 = vmatprep.subr.bf16.mxu0 %v3192_v29  ;;  %v3277_v23 = vld [vmem:[%s4752_s1 + $0xcc] ss:$24 sps:$4 sm:$0xff]   ;;  %v3275_v25 = vld [vmem:[%s4752_s1 + $0xc8] ss:$24 sps:$4 sm:$0xff]   ;;  %v3283_v27 = vld [vmem:[%s4752_s1 + $0xfc] ss:$24 sps:$4 sm:$0xff]  }
  0x1e   :  { %v3280_v26 = vld [vmem:[%s4752_s1 + $0x6f4] ss:$24 sps:$4 sm:$0xff]   ;;  %v3278_v28 = vld [vmem:[%s4752_s1 + $0x6f0] ss:$24 sps:$4 sm:$0xff]  }
  0x1f   :  { %1820 = vmatpush1.bf16.msra.mxu1 %v3194_v30  ;;  %v3281_v29 = vld [vmem:[%s4752_s1 + $0xf8] ss:$24 sps:$4 sm:$0xff]   ;;  %v3286_v30 = vld [vmem:[%s4752_s1 + $0x724] ss:$24 sps:$4 sm:$0xff]  }
  0x20   :  { %1861 = vmatpush1.bf16.msra.mxu0 %v3195_v31  ;;  %1821 = vmatprep.subr.bf16.mxu1 %v3196_v32  ;;  %v3289_v31 = vld [vmem:[%s4752_s1 + $0x12c] ss:$24 sps:$4 sm:$0xff]   ;;  %v3960_v32 = vld [vmem:[%s4753_s0 + $0x10] sm:$0xff] }
  0x21   :  { %1862 = vmatprep.subr.bf16.mxu0 %v3198_v33  ;;  %v3284_v33 = vld [vmem:[%s4752_s1 + $0x720] ss:$24 sps:$4 sm:$0xff]   ;;  %v3302_v46 = vld [vmem:[%s4752_s1 + $0x7b0] ss:$24 sps:$4 sm:$0xff]  }
  0x22   :  { %v3305_v48 = vld [vmem:[%s4752_s1 + $0x1b8] ss:$24 sps:$4 sm:$0xff]  }
  0x23   :  { %1822 = vmatpush1.bf16.msra.mxu1 %v3200_v34  ;;  %v3967_v34 = vcombine.high %v3960_v32, %v3960_v32 }
  0x24   :  { %1863 = vmatpush1.bf16.msra.mxu0 %v3201_v35  ;;  %1823 = vmatprep.subr.bf16.mxu1 %v3202_v36  ;;  %v3287_v35 = vld [vmem:[%s4752_s1 + $0x128] ss:$24 sps:$4 sm:$0xff]   ;;  %v3292_v36 = vld [vmem:[%s4752_s1 + $0x754] ss:$24 sps:$4 sm:$0xff]  }
  0x25   :  { %1864 = vmatprep.subr.bf16.mxu0 %v3204_v37  ;;  %v3295_v37 = vld [vmem:[%s4752_s1 + $0x15c] ss:$24 sps:$4 sm:$0xff]  }
  0x27   :  { %1824 = vmatpush1.bf16.msra.mxu1 %v3206_v38  ;;  %v3290_v38 = vld [vmem:[%s4752_s1 + $0x750] ss:$24 sps:$4 sm:$0xff]  }
  0x28   :  { %1865 = vmatpush1.bf16.msra.mxu0 %v3207_v39  ;;  %1825 = vmatprep.subr.bf16.mxu1 %v3208_v40  ;;  %v3293_v39 = vld [vmem:[%s4752_s1 + $0x158] ss:$24 sps:$4 sm:$0xff]   ;;  %v3298_v40 = vld [vmem:[%s4752_s1 + $0x784] ss:$24 sps:$4 sm:$0xff]  }
  0x29   :  { %1866 = vmatprep.subr.bf16.mxu0 %v3210_v41  ;;  %v3301_v41 = vld [vmem:[%s4752_s1 + $0x18c] ss:$24 sps:$4 sm:$0xff]  }
  0x2b   :  { %1826 = vmatpush1.bf16.msra.mxu1 %v3212_v42  ;;  %v3296_v42 = vld [vmem:[%s4752_s1 + $0x780] ss:$24 sps:$4 sm:$0xff]  }
  0x2c   :  { %1867 = vmatpush1.bf16.msra.mxu0 %v3213_v43  ;;  %1827 = vmatprep.subr.bf16.mxu1 %v3214_v44  ;;  %v3299_v43 = vld [vmem:[%s4752_s1 + $0x188] ss:$24 sps:$4 sm:$0xff]   ;;  %v3304_v44 = vld [vmem:[%s4752_s1 + $0x7b4] ss:$24 sps:$4 sm:$0xff]  }
  0x2d   :  { %1868 = vmatprep.subr.bf16.mxu0 %v3216_v45  ;;  %v3307_v45 = vld [vmem:[%s4752_s1 + $0x1bc] ss:$24 sps:$4 sm:$0xff]  }
  0x2f   :  { %1828 = vmatpush1.bf16.msra.mxu1 %v3218_v49  ;;  %v3310_v49 = vld [vmem:[%s4752_s1 + $0x7e4] ss:$24 sps:$4 sm:$0xff]  }
  0x30   :  { %1869 = vmatpush1.bf16.msra.mxu0 %v3219_v50  ;;  %1829 = vmatprep.subr.bf16.mxu1 %v3220_v52  ;;  %v3313_v50 = vld [vmem:[%s4752_s1 + $0x1ec] ss:$24 sps:$4 sm:$0xff]   ;;  %v3308_v52 = vld [vmem:[%s4752_s1 + $0x7e0] ss:$24 sps:$4 sm:$0xff]  }
  0x31   :  { %1870 = vmatprep.subr.bf16.mxu0 %v3222_v53  ;;  %v3311_v53 = vld [vmem:[%s4752_s1 + $0x1e8] ss:$24 sps:$4 sm:$0xff]  }
  0x33   :  { %1830 = vmatpush1.bf16.msra.mxu1 %v3224_v54  ;;  %v3316_v54 = vld [vmem:[%s4752_s1 + $0x814] ss:$24 sps:$4 sm:$0xff]  }
  0x34   :  { %1871 = vmatpush1.bf16.msra.mxu0 %v3225_v55  ;;  %1831 = vmatprep.subr.bf16.mxu1 %v3226_v56  ;;  %v3319_v55 = vld [vmem:[%s4752_s1 + $0x21c] ss:$24 sps:$4 sm:$0xff]   ;;  %v3314_v56 = vld [vmem:[%s4752_s1 + $0x810] ss:$24 sps:$4 sm:$0xff]  }
  0x35   :  { %1872 = vmatprep.subr.bf16.mxu0 %v3228_v57  ;;  %v3317_v57 = vld [vmem:[%s4752_s1 + $0x218] ss:$24 sps:$4 sm:$0xff]  }
  0x37   :  { %1832 = vmatpush1.bf16.msra.mxu1 %v3230_v58  ;;  %v3322_v58 = vld [vmem:[%s4752_s1 + $0x844] ss:$24 sps:$4 sm:$0xff]  }
  0x38   :  { %1873 = vmatpush1.bf16.msra.mxu0 %v3231_v59  ;;  %1833 = vmatprep.subr.bf16.mxu1 %v3232_v60  ;;  %v3325_v59 = vld [vmem:[%s4752_s1 + $0x24c] ss:$24 sps:$4 sm:$0xff]   ;;  %v3320_v60 = vld [vmem:[%s4752_s1 + $0x840] ss:$24 sps:$4 sm:$0xff]  }
  0x39   :  { %1874 = vmatprep.subr.bf16.mxu0 %v3234_v61  ;;  %v3323_v61 = vld [vmem:[%s4752_s1 + $0x248] ss:$24 sps:$4 sm:$0xff]  }
  0x3b   :  { %1834 = vmatpush1.bf16.msra.mxu1 %v3236_v62  ;;  %v3328_v62 = vld [vmem:[%s4752_s1 + $0x874] ss:$24 sps:$4 sm:$0xff]  }
  0x3c   :  { %1875 = vmatpush1.bf16.msra.mxu0 %v3237_v63  ;;  %1835 = vmatprep.subr.bf16.mxu1 %v3238_v0  ;;  %v3331_v63 = vld [vmem:[%s4752_s1 + $0x27c] ss:$24 sps:$4 sm:$0xff]   ;;  %v3326_v0 = vld [vmem:[%s4752_s1 + $0x870] ss:$24 sps:$4 sm:$0xff]  }
  0x3d   :  { %1876 = vmatprep.subr.bf16.mxu0 %v3240_v1  ;;  %v3329_v1 = vld [vmem:[%s4752_s1 + $0x278] ss:$24 sps:$4 sm:$0xff]  }
  0x3f   :  { %1836 = vmatpush1.bf16.msra.mxu1 %v3242_v2  ;;  %v3334_v2 = vld [vmem:[%s4752_s1 + $0x8a4] ss:$24 sps:$4 sm:$0xff]  }
  0x40   :  { %1877 = vmatpush1.bf16.msra.mxu0 %v3243_v3  ;;  %1928 = vmatprep.subr.bf16.mxu1 %v3251_v5  ;;  %v3337_v3 = vld [vmem:[%s4752_s1 + $0x2ac] ss:$24 sps:$4 sm:$0xff]   ;;  %v3335_v5 = vld [vmem:[%s4752_s1 + $0x2a8] ss:$24 sps:$4 sm:$0xff]  }
  0x41   :  { %1887 = vmatprep.subr.bf16.mxu0 %v3248_v4  ;;  %v3332_v4 = vld [vmem:[%s4752_s1 + $0x8a0] ss:$24 sps:$4 sm:$0xff]  }
  0x42   :  { %1838 = vmatmul.mubr.bf16.vlgmr.msra.gmra.mrb[0].mxu1 %v3878_v6 }
  0x43   :  { %1879 = vmatmul.mubr.bf16.vlgmr.msra.gmra.mrb[0].mxu0 %v3880_v7  ;;  %1929 = vmatpush1.bf16.msra.mxu1 %v3249_v9  ;;  %v3343_v9 = vld [vmem:[%s4752_s1 + $0x2dc] ss:$24 sps:$4 sm:$0xff]  }
  0x44   :  { %1888 = vmatpush1.bf16.msra.mxu0 %v3246_v8  ;;  %1930 = vmatprep.subr.bf16.mxu1 %v3259_v11  ;;  %v3340_v8 = vld [vmem:[%s4752_s1 + $0x8d4] ss:$24 sps:$4 sm:$0xff]   ;;  %v3341_v11 = vld [vmem:[%s4752_s1 + $0x2d8] ss:$24 sps:$4 sm:$0xff]  }
  0x45   :  { %1889 = vmatprep.subr.bf16.mxu0 %v3256_v10  ;;  %1960 = vmatprep.mubr.bf16.mxu1 %v3809_v47  ;;  %v3338_v10 = vld [vmem:[%s4752_s1 + $0x8d0] ss:$24 sps:$4 sm:$0xff]  }
  0x46   :  { %1919 = vmatprep.mubr.bf16.mxu0 %v3967_v34 }
  0x47   :  { %1931 = vmatpush1.bf16.msra.mxu1 %v3257_v13  ;;  %v3351_v13 = vld [vmem:[%s4752_s1 + $0x14] ss:$24 sps:$4 sm:$0xff]  }
  0x48   :  { %1890 = vmatpush1.bf16.msra.mxu0 %v3254_v12  ;;  %1932 = vmatprep.subr.bf16.mxu1 %v3265_v15  ;;  %v3348_v12 = vld [vmem:[%s4752_s1 + $0x30c] ss:$24 sps:$4 sm:$0xff]   ;;  %v3346_v15 = vld [vmem:[%s4752_s1 + $0x308] ss:$24 sps:$4 sm:$0xff]  }
  0x49   :  { %1891 = vmatprep.subr.bf16.mxu0 %v3262_v14  ;;  %v4089_v14 = vcombine.low %v3960_v32, %v3960_v32  ;;  %v3378_v32 = vld [vmem:[%s4752_s1 + $0x3fc] ss:$24 sps:$4 sm:$0xff]  }
  0x4b   :  { %1933 = vmatpush1.bf16.msra.mxu1 %v3263_v17  ;;  %v3354_v17 = vld [vmem:[%s4752_s1 + $0x33c] ss:$24 sps:$4 sm:$0xff]  }
  0x4c   :  { %1892 = vmatpush1.bf16.msra.mxu0 %v3260_v16  ;;  %1934 = vmatprep.subr.bf16.mxu1 %v3271_v19  ;;  %v3349_v16 = vld [vmem:[%s4752_s1 + $0x10] ss:$24 sps:$4 sm:$0xff]  }
  0x4d   :  { %1893 = vmatprep.subr.bf16.mxu0 %v3268_v18  ;;  %v3357_v18 = vld [vmem:[%s4752_s1 + $0x44] ss:$24 sps:$4 sm:$0xff]   ;;  %v3352_v19 = vld [vmem:[%s4752_s1 + $0x338] ss:$24 sps:$4 sm:$0xff]  }
  0x4f   :  { %1935 = vmatpush1.bf16.msra.mxu1 %v3269_v21  ;;  %v3360_v21 = vld [vmem:[%s4752_s1 + $0x36c] ss:$24 sps:$4 sm:$0xff]  }
  0x50   :  { %1894 = vmatpush1.bf16.msra.mxu0 %v3266_v20  ;;  %1936 = vmatprep.subr.bf16.mxu1 %v3277_v23  ;;  %v3355_v20 = vld [vmem:[%s4752_s1 + $0x40] ss:$24 sps:$4 sm:$0xff]  }
  0x51   :  { %1895 = vmatprep.subr.bf16.mxu0 %v3274_v22  ;;  %v3363_v22 = vld [vmem:[%s4752_s1 + $0x74] ss:$24 sps:$4 sm:$0xff]   ;;  %v3358_v23 = vld [vmem:[%s4752_s1 + $0x368] ss:$24 sps:$4 sm:$0xff]  }
  0x53   :  { %1937 = vmatpush1.bf16.msra.mxu1 %v3275_v25  ;;  %v3366_v25 = vld [vmem:[%s4752_s1 + $0x39c] ss:$24 sps:$4 sm:$0xff]  }
  0x54   :  { %1896 = vmatpush1.bf16.msra.mxu0 %v3272_v24  ;;  %1938 = vmatprep.subr.bf16.mxu1 %v3283_v27  ;;  %v3361_v24 = vld [vmem:[%s4752_s1 + $0x70] ss:$24 sps:$4 sm:$0xff]   ;;  %v3367_v27 = vld [vmem:[%s4752_s1 + $0xa0] ss:$24 sps:$4 sm:$0xff]  }
  0x55   :  { %1897 = vmatprep.subr.bf16.mxu0 %v3280_v26  ;;  %v3364_v26 = vld [vmem:[%s4752_s1 + $0x398] ss:$24 sps:$4 sm:$0xff]  }
  0x57   :  { %1939 = vmatpush1.bf16.msra.mxu1 %v3281_v29  ;;  %v3375_v29 = vld [vmem:[%s4752_s1 + $0xd4] ss:$24 sps:$4 sm:$0xff]  }
  0x58   :  { %1898 = vmatpush1.bf16.msra.mxu0 %v3278_v28  ;;  %1940 = vmatprep.subr.bf16.mxu1 %v3289_v31  ;;  %v3372_v28 = vld [vmem:[%s4752_s1 + $0x3cc] ss:$24 sps:$4 sm:$0xff]   ;;  %v3373_v31 = vld [vmem:[%s4752_s1 + $0xd0] ss:$24 sps:$4 sm:$0xff]  }
  0x59   :  { %1899 = vmatprep.subr.bf16.mxu0 %v3286_v30  ;;  %v3370_v30 = vld [vmem:[%s4752_s1 + $0x3c8] ss:$24 sps:$4 sm:$0xff]  }
  0x5b   :  { %1941 = vmatpush1.bf16.msra.mxu1 %v3287_v35  ;;  %v3376_v35 = vld [vmem:[%s4752_s1 + $0x3f8] ss:$24 sps:$4 sm:$0xff]  }
  0x5c   :  { %1900 = vmatpush1.bf16.msra.mxu0 %v3284_v33  ;;  %1942 = vmatprep.subr.bf16.mxu1 %v3295_v37  ;;  %v3381_v33 = vld [vmem:[%s4752_s1 + $0x104] ss:$24 sps:$4 sm:$0xff]  }
  0x5d   :  { %1901 = vmatprep.subr.bf16.mxu0 %v3292_v36  ;;  %v3379_v36 = vld [vmem:[%s4752_s1 + $0x100] ss:$24 sps:$4 sm:$0xff]   ;;  %v3384_v37 = vld [vmem:[%s4752_s1 + $0x42c] ss:$24 sps:$4 sm:$0xff]  }
  0x5f   :  { %1943 = vmatpush1.bf16.msra.mxu1 %v3293_v39  ;;  %v3382_v39 = vld [vmem:[%s4752_s1 + $0x428] ss:$24 sps:$4 sm:$0xff]  }
  0x60   :  { %1902 = vmatpush1.bf16.msra.mxu0 %v3290_v38  ;;  %1944 = vmatprep.subr.bf16.mxu1 %v3301_v41  ;;  %v3387_v38 = vld [vmem:[%s4752_s1 + $0x134] ss:$24 sps:$4 sm:$0xff]  }
  0x61   :  { %1903 = vmatprep.subr.bf16.mxu0 %v3298_v40  ;;  %v3385_v40 = vld [vmem:[%s4752_s1 + $0x130] ss:$24 sps:$4 sm:$0xff]   ;;  %v3390_v41 = vld [vmem:[%s4752_s1 + $0x45c] ss:$24 sps:$4 sm:$0xff]  }
  0x63   :  { %1945 = vmatpush1.bf16.msra.mxu1 %v3299_v43  ;;  %v3388_v43 = vld [vmem:[%s4752_s1 + $0x458] ss:$24 sps:$4 sm:$0xff]  }
  0x64   :  { %1904 = vmatpush1.bf16.msra.mxu0 %v3296_v42  ;;  %1946 = vmatprep.subr.bf16.mxu1 %v3307_v45  ;;  %v3393_v42 = vld [vmem:[%s4752_s1 + $0x164] ss:$24 sps:$4 sm:$0xff]  }
  0x65   :  { %1905 = vmatprep.subr.bf16.mxu0 %v3304_v44  ;;  %v3391_v44 = vld [vmem:[%s4752_s1 + $0x160] ss:$24 sps:$4 sm:$0xff]   ;;  %v3396_v45 = vld [vmem:[%s4752_s1 + $0x48c] ss:$24 sps:$4 sm:$0xff]  }
  0x67   :  { %1947 = vmatpush1.bf16.msra.mxu1 %v3305_v48  ;;  %v3394_v48 = vld [vmem:[%s4752_s1 + $0x488] ss:$24 sps:$4 sm:$0xff]  }
  0x68   :  { %1906 = vmatpush1.bf16.msra.mxu0 %v3302_v46  ;;  %1948 = vmatprep.subr.bf16.mxu1 %v3313_v50  ;;  %v3399_v46 = vld [vmem:[%s4752_s1 + $0x194] ss:$24 sps:$4 sm:$0xff]  }
  0x69   :  { %1907 = vmatprep.subr.bf16.mxu0 %v3310_v49  ;;  %v3397_v49 = vld [vmem:[%s4752_s1 + $0x190] ss:$24 sps:$4 sm:$0xff]   ;;  %v3402_v50 = vld [vmem:[%s4752_s1 + $0x4bc] ss:$24 sps:$4 sm:$0xff]  }
  0x6b   :  { %1949 = vmatpush1.bf16.msra.mxu1 %v3311_v53  ;;  %v3400_v53 = vld [vmem:[%s4752_s1 + $0x4b8] ss:$24 sps:$4 sm:$0xff]  }
  0x6c   :  { %1908 = vmatpush1.bf16.msra.mxu0 %v3308_v52  ;;  %1950 = vmatprep.subr.bf16.mxu1 %v3319_v55  ;;  %v3405_v52 = vld [vmem:[%s4752_s1 + $0x1c4] ss:$24 sps:$4 sm:$0xff]  }
  0x6d   :  { %1909 = vmatprep.subr.bf16.mxu0 %v3316_v54  ;;  %v3403_v54 = vld [vmem:[%s4752_s1 + $0x1c0] ss:$24 sps:$4 sm:$0xff]   ;;  %v3408_v55 = vld [vmem:[%s4752_s1 + $0x4ec] ss:$24 sps:$4 sm:$0xff]  }
  0x6f   :  { %1951 = vmatpush1.bf16.msra.mxu1 %v3317_v57  ;;  %v3406_v57 = vld [vmem:[%s4752_s1 + $0x4e8] ss:$24 sps:$4 sm:$0xff]  }
  0x70   :  { %1910 = vmatpush1.bf16.msra.mxu0 %v3314_v56  ;;  %1952 = vmatprep.subr.bf16.mxu1 %v3325_v59  ;;  %v3411_v56 = vld [vmem:[%s4752_s1 + $0x1f4] ss:$24 sps:$4 sm:$0xff]  }
  0x71   :  { %1911 = vmatprep.subr.bf16.mxu0 %v3322_v58  ;;  %v3409_v58 = vld [vmem:[%s4752_s1 + $0x1f0] ss:$24 sps:$4 sm:$0xff]   ;;  %v3414_v59 = vld [vmem:[%s4752_s1 + $0x51c] ss:$24 sps:$4 sm:$0xff]  }
  0x73   :  { %1953 = vmatpush1.bf16.msra.mxu1 %v3323_v61  ;;  %v3412_v61 = vld [vmem:[%s4752_s1 + $0x518] ss:$24 sps:$4 sm:$0xff]  }
  0x74   :  { %1912 = vmatpush1.bf16.msra.mxu0 %v3320_v60  ;;  %1954 = vmatprep.subr.bf16.mxu1 %v3331_v63  ;;  %v3417_v60 = vld [vmem:[%s4752_s1 + $0x224] ss:$24 sps:$4 sm:$0xff]  }
  0x75   :  { %1913 = vmatprep.subr.bf16.mxu0 %v3328_v62  ;;  %v3415_v62 = vld [vmem:[%s4752_s1 + $0x220] ss:$24 sps:$4 sm:$0xff]   ;;  %v3420_v63 = vld [vmem:[%s4752_s1 + $0x54c] ss:$24 sps:$4 sm:$0xff]  }
  0x77   :  { %1955 = vmatpush1.bf16.msra.mxu1 %v3329_v1  ;;  %v3418_v1 = vld [vmem:[%s4752_s1 + $0x548] ss:$24 sps:$4 sm:$0xff]  }
  0x78   :  { %1914 = vmatpush1.bf16.msra.mxu0 %v3326_v0  ;;  %1956 = vmatprep.subr.bf16.mxu1 %v3337_v3  ;;  %v3423_v0 = vld [vmem:[%s4752_s1 + $0x254] ss:$24 sps:$4 sm:$0xff]  }
  0x79   :  { %1915 = vmatprep.subr.bf16.mxu0 %v3334_v2  ;;  %v3421_v2 = vld [vmem:[%s4752_s1 + $0x250] ss:$24 sps:$4 sm:$0xff]   ;;  %v3426_v3 = vld [vmem:[%s4752_s1 + $0x57c] ss:$24 sps:$4 sm:$0xff]  }
  0x7b   :  { %1957 = vmatpush1.bf16.msra.mxu1 %v3335_v5  ;;  %v3424_v5 = vld [vmem:[%s4752_s1 + $0x578] ss:$24 sps:$4 sm:$0xff]  }
  0x7c   :  { %1916 = vmatpush1.bf16.msra.mxu0 %v3332_v4  ;;  %1958 = vmatprep.subr.bf16.mxu1 %v3343_v9  ;;  %v3429_v4 = vld [vmem:[%s4752_s1 + $0x284] ss:$24 sps:$4 sm:$0xff]  }
  0x7d   :  { %1917 = vmatprep.subr.bf16.mxu0 %v3340_v8  ;;  %v3427_v8 = vld [vmem:[%s4752_s1 + $0x280] ss:$24 sps:$4 sm:$0xff]   ;;  %v3432_v9 = vld [vmem:[%s4752_s1 + $0x5ac] ss:$24 sps:$4 sm:$0xff]  }
  0x7f   :  { %1959 = vmatpush1.bf16.msra.mxu1 %v3341_v11  ;;  %v3430_v11 = vld [vmem:[%s4752_s1 + $0x5a8] ss:$24 sps:$4 sm:$0xff]  }
  0x80   :  { %1918 = vmatpush1.bf16.msra.mxu0 %v3338_v10  ;;  %1969 = vmatprep.subr.bf16.mxu1 %v3348_v12  ;;  %v3435_v10 = vld [vmem:[%s4752_s1 + $0x2b4] ss:$24 sps:$4 sm:$0xff]   ;;  %v3433_v12 = vld [vmem:[%s4752_s1 + $0x2b0] ss:$24 sps:$4 sm:$0xff]  }
  0x81   :  { %2051 = vmatprep.subr.bf16.mxu0 %v3351_v13  ;;  %v3438_v13 = vld [vmem:[%s4752_s1 + $0x5dc] ss:$24 sps:$4 sm:$0xff]  }
  0x82   :  { %1961 = vmatmul.mubr.bf16.vlgmr.msra.gmra.mrb[4].mxu1 %v3878_v6 }
  0x83   :  { %1920 = vmatmul.mubr.bf16.vlgmr.msra.gmra.mrb[0].mxu0 %v4089_v14  ;;  %1970 = vmatpush1.bf16.msra.mxu1 %v3346_v15  ;;  %v3441_v15 = vld [vmem:[%s4752_s1 + $0x2e4] ss:$24 sps:$4 sm:$0xff]  }
  0x84   :  { %2052 = vmatpush1.bf16.msra.mxu0 %v3349_v16  ;;  %1971 = vmatprep.subr.bf16.mxu1 %v3354_v17  ;;  %v3436_v16 = vld [vmem:[%s4752_s1 + $0x5d8] ss:$24 sps:$4 sm:$0xff]  }
  0x85   :  { %2053 = vmatprep.subr.bf16.mxu0 %v3357_v18  ;;  %2001 = vmatprep.mubr.bf16.mxu1 %v3820_v51  ;;  %v3439_v17 = vld [vmem:[%s4752_s1 + $0x2e0] ss:$24 sps:$4 sm:$0xff]   ;;  %v3444_v18 = vld [vmem:[%s4752_s1 + $0x60c] ss:$24 sps:$4 sm:$0xff]  }
  0x86   :  { %2083 = vmatprep.mubr.bf16.mxu0 %v3809_v47  ;;  %v3369_v47 = vld [vmem:[%s4752_s1 + $0xa4] ss:$24 sps:$4 sm:$0xff]  }
  0x87   :  { %1972 = vmatpush1.bf16.msra.mxu1 %v3352_v19  ;;  %v3447_v19 = vld [vmem:[%s4752_s1 + $0x314] ss:$24 sps:$4 sm:$0xff]  }
  0x88   :  { %2054 = vmatpush1.bf16.msra.mxu0 %v3355_v20  ;;  %1973 = vmatprep.subr.bf16.mxu1 %v3360_v21  ;;  %v3442_v20 = vld [vmem:[%s4752_s1 + $0x608] ss:$24 sps:$4 sm:$0xff]  }
  0x89   :  { %2055 = vmatprep.subr.bf16.mxu0 %v3363_v22  ;;  %v3445_v21 = vld [vmem:[%s4752_s1 + $0x310] ss:$24 sps:$4 sm:$0xff]   ;;  %v3450_v22 = vld [vmem:[%s4752_s1 + $0x63c] ss:$24 sps:$4 sm:$0xff]  }
  0x8b   :  { %1974 = vmatpush1.bf16.msra.mxu1 %v3358_v23  ;;  %v3453_v23 = vld [vmem:[%s4752_s1 + $0x344] ss:$24 sps:$4 sm:$0xff]  }
  0x8c   :  { %2056 = vmatpush1.bf16.msra.mxu0 %v3361_v24  ;;  %1975 = vmatprep.subr.bf16.mxu1 %v3366_v25  ;;  %v3448_v24 = vld [vmem:[%s4752_s1 + $0x638] ss:$24 sps:$4 sm:$0xff]  }
  0x8d   :  { %2057 = vmatprep.subr.bf16.mxu0 %v3369_v47  ;;  %v3451_v25 = vld [vmem:[%s4752_s1 + $0x340] ss:$24 sps:$4 sm:$0xff]   ;;  %v3456_v47 = vld [vmem:[%s4752_s1 + $0x66c] ss:$24 sps:$4 sm:$0xff]  }
  0x8f   :  { %1976 = vmatpush1.bf16.msra.mxu1 %v3364_v26  ;;  %v3459_v26 = vld [vmem:[%s4752_s1 + $0x374] ss:$24 sps:$4 sm:$0xff]  }
  0x90   :  { %2058 = vmatpush1.bf16.msra.mxu0 %v3367_v27  ;;  %1977 = vmatprep.subr.bf16.mxu1 %v3372_v28  ;;  %v3457_v27 = vld [vmem:[%s4752_s1 + $0x370] ss:$24 sps:$4 sm:$0xff]   ;;  %v3462_v28 = vld [vmem:[%s4752_s1 + $0x69c] ss:$24 sps:$4 sm:$0xff]  }
  0x91   :  { %2059 = vmatprep.subr.bf16.mxu0 %v3375_v29  ;;  %v3465_v29 = vld [vmem:[%s4752_s1 + $0x3a4] ss:$24 sps:$4 sm:$0xff]  }
  0x93   :  { %1978 = vmatpush1.bf16.msra.mxu1 %v3370_v30  ;;  %v3463_v30 = vld [vmem:[%s4752_s1 + $0x3a0] ss:$24 sps:$4 sm:$0xff]  }
  0x94   :  { %2060 = vmatpush1.bf16.msra.mxu0 %v3373_v31  ;;  %1979 = vmatprep.subr.bf16.mxu1 %v3378_v32  ;;  %v3468_v31 = vld [vmem:[%s4752_s1 + $0x6cc] ss:$24 sps:$4 sm:$0xff]  }
  0x95   :  { %2061 = vmatprep.subr.bf16.mxu0 %v3381_v33  ;;  %v3471_v32 = vld [vmem:[%s4752_s1 + $0x3d4] ss:$24 sps:$4 sm:$0xff]   ;;  %v3466_v33 = vld [vmem:[%s4752_s1 + $0x6c8] ss:$24 sps:$4 sm:$0xff]  }
  0x97   :  { %1980 = vmatpush1.bf16.msra.mxu1 %v3376_v35  ;;  %v3469_v35 = vld [vmem:[%s4752_s1 + $0x3d0] ss:$24 sps:$4 sm:$0xff]  }
  0x98   :  { %2062 = vmatpush1.bf16.msra.mxu0 %v3379_v36  ;;  %1981 = vmatprep.subr.bf16.mxu1 %v3384_v37  ;;  %v3474_v36 = vld [vmem:[%s4752_s1 + $0x6fc] ss:$24 sps:$4 sm:$0xff]  }
  0x99   :  { %2063 = vmatprep.subr.bf16.mxu0 %v3387_v38  ;;  %v3477_v37 = vld [vmem:[%s4752_s1 + $0x404] ss:$24 sps:$4 sm:$0xff]   ;;  %v3472_v38 = vld [vmem:[%s4752_s1 + $0x6f8] ss:$24 sps:$4 sm:$0xff]  }
  0x9b   :  { %1982 = vmatpush1.bf16.msra.mxu1 %v3382_v39  ;;  %v3475_v39 = vld [vmem:[%s4752_s1 + $0x400] ss:$24 sps:$4 sm:$0xff]  }
  0x9c   :  { %2064 = vmatpush1.bf16.msra.mxu0 %v3385_v40  ;;  %1983 = vmatprep.subr.bf16.mxu1 %v3390_v41  ;;  %v3480_v40 = vld [vmem:[%s4752_s1 + $0x72c] ss:$24 sps:$4 sm:$0xff]  }
  0x9d   :  { %2065 = vmatprep.subr.bf16.mxu0 %v3393_v42  ;;  %v3483_v41 = vld [vmem:[%s4752_s1 + $0x434] ss:$24 sps:$4 sm:$0xff]   ;;  %v3478_v42 = vld [vmem:[%s4752_s1 + $0x728] ss:$24 sps:$4 sm:$0xff]  }
  0x9f   :  { %1984 = vmatpush1.bf16.msra.mxu1 %v3388_v43  ;;  %v3481_v43 = vld [vmem:[%s4752_s1 + $0x430] ss:$24 sps:$4 sm:$0xff]  }
  0xa0   :  { %2066 = vmatpush1.bf16.msra.mxu0 %v3391_v44  ;;  %1985 = vmatprep.subr.bf16.mxu1 %v3396_v45  ;;  %v3486_v44 = vld [vmem:[%s4752_s1 + $0x75c] ss:$24 sps:$4 sm:$0xff]  }
  0xa1   :  { %2067 = vmatprep.subr.bf16.mxu0 %v3399_v46  ;;  %v3489_v45 = vld [vmem:[%s4752_s1 + $0x464] ss:$24 sps:$4 sm:$0xff]   ;;  %v3484_v46 = vld [vmem:[%s4752_s1 + $0x758] ss:$24 sps:$4 sm:$0xff]  }
  0xa3   :  { %1986 = vmatpush1.bf16.msra.mxu1 %v3394_v48  ;;  %v3487_v48 = vld [vmem:[%s4752_s1 + $0x460] ss:$24 sps:$4 sm:$0xff]  }
  0xa4   :  { %2068 = vmatpush1.bf16.msra.mxu0 %v3397_v49  ;;  %1987 = vmatprep.subr.bf16.mxu1 %v3402_v50  ;;  %v3492_v49 = vld [vmem:[%s4752_s1 + $0x78c] ss:$24 sps:$4 sm:$0xff]  }
  0xa5   :  { %2069 = vmatprep.subr.bf16.mxu0 %v3405_v52  ;;  %v3495_v50 = vld [vmem:[%s4752_s1 + $0x494] ss:$24 sps:$4 sm:$0xff]   ;;  %v3490_v52 = vld [vmem:[%s4752_s1 + $0x788] ss:$24 sps:$4 sm:$0xff]  }
  0xa7   :  { %1988 = vmatpush1.bf16.msra.mxu1 %v3400_v53  ;;  %v3493_v53 = vld [vmem:[%s4752_s1 + $0x490] ss:$24 sps:$4 sm:$0xff]  }
  0xa8   :  { %2070 = vmatpush1.bf16.msra.mxu0 %v3403_v54  ;;  %1989 = vmatprep.subr.bf16.mxu1 %v3408_v55  ;;  %v3498_v54 = vld [vmem:[%s4752_s1 + $0x7bc] ss:$24 sps:$4 sm:$0xff]  }
  0xa9   :  { %2071 = vmatprep.subr.bf16.mxu0 %v3411_v56  ;;  %v3501_v55 = vld [vmem:[%s4752_s1 + $0x4c4] ss:$24 sps:$4 sm:$0xff]   ;;  %v3496_v56 = vld [vmem:[%s4752_s1 + $0x7b8] ss:$24 sps:$4 sm:$0xff]  }
  0xab   :  { %1990 = vmatpush1.bf16.msra.mxu1 %v3406_v57  ;;  %v3499_v57 = vld [vmem:[%s4752_s1 + $0x4c0] ss:$24 sps:$4 sm:$0xff]  }
  0xac   :  { %2072 = vmatpush1.bf16.msra.mxu0 %v3409_v58  ;;  %1991 = vmatprep.subr.bf16.mxu1 %v3414_v59  ;;  %v3504_v58 = vld [vmem:[%s4752_s1 + $0x7ec] ss:$24 sps:$4 sm:$0xff]  }
  0xad   :  { %2073 = vmatprep.subr.bf16.mxu0 %v3417_v60  ;;  %v3507_v59 = vld [vmem:[%s4752_s1 + $0x4f4] ss:$24 sps:$4 sm:$0xff]   ;;  %v3502_v60 = vld [vmem:[%s4752_s1 + $0x7e8] ss:$24 sps:$4 sm:$0xff]  }
  0xaf   :  { %1992 = vmatpush1.bf16.msra.mxu1 %v3412_v61  ;;  %v3505_v61 = vld [vmem:[%s4752_s1 + $0x4f0] ss:$24 sps:$4 sm:$0xff]  }
  0xb0   :  { %2074 = vmatpush1.bf16.msra.mxu0 %v3415_v62  ;;  %1993 = vmatprep.subr.bf16.mxu1 %v3420_v63  ;;  %v3510_v62 = vld [vmem:[%s4752_s1 + $0x81c] ss:$24 sps:$4 sm:$0xff]  }
  0xb1   :  { %2075 = vmatprep.subr.bf16.mxu0 %v3423_v0  ;;  %v3513_v63 = vld [vmem:[%s4752_s1 + $0x524] ss:$24 sps:$4 sm:$0xff]   ;;  %v3508_v0 = vld [vmem:[%s4752_s1 + $0x818] ss:$24 sps:$4 sm:$0xff]  }
  0xb3   :  { %1994 = vmatpush1.bf16.msra.mxu1 %v3418_v1  ;;  %v3511_v1 = vld [vmem:[%s4752_s1 + $0x520] ss:$24 sps:$4 sm:$0xff]  }
  0xb4   :  { %2076 = vmatpush1.bf16.msra.mxu0 %v3421_v2  ;;  %1995 = vmatprep.subr.bf16.mxu1 %v3426_v3  ;;  %v3516_v2 = vld [vmem:[%s4752_s1 + $0x84c] ss:$24 sps:$4 sm:$0xff]  }
  0xb5   :  { %2077 = vmatprep.subr.bf16.mxu0 %v3429_v4  ;;  %v3519_v3 = vld [vmem:[%s4752_s1 + $0x554] ss:$24 sps:$4 sm:$0xff]   ;;  %v3514_v4 = vld [vmem:[%s4752_s1 + $0x848] ss:$24 sps:$4 sm:$0xff]  }
  0xb7   :  { %1996 = vmatpush1.bf16.msra.mxu1 %v3424_v5  ;;  %v3517_v5 = vld [vmem:[%s4752_s1 + $0x550] ss:$24 sps:$4 sm:$0xff]  }
  0xb8   :  { %2078 = vmatpush1.bf16.msra.mxu0 %v3427_v8  ;;  %1997 = vmatprep.subr.bf16.mxu1 %v3432_v9  ;;  %v3522_v8 = vld [vmem:[%s4752_s1 + $0x87c] ss:$24 sps:$4 sm:$0xff]  }
  0xb9   :  { %2079 = vmatprep.subr.bf16.mxu0 %v3435_v10  ;;  %v3525_v9 = vld [vmem:[%s4752_s1 + $0x584] ss:$24 sps:$4 sm:$0xff]   ;;  %v3520_v10 = vld [vmem:[%s4752_s1 + $0x878] ss:$24 sps:$4 sm:$0xff]  }
  0xbb   :  { %1998 = vmatpush1.bf16.msra.mxu1 %v3430_v11  ;;  %v3523_v11 = vld [vmem:[%s4752_s1 + $0x580] ss:$24 sps:$4 sm:$0xff]  }
  0xbc   :  { %2080 = vmatpush1.bf16.msra.mxu0 %v3433_v12  ;;  %1999 = vmatprep.subr.bf16.mxu1 %v3438_v13  ;;  %v3528_v12 = vld [vmem:[%s4752_s1 + $0x8ac] ss:$24 sps:$4 sm:$0xff]  }
  0xbd   :  { %2081 = vmatprep.subr.bf16.mxu0 %v3441_v15  ;;  %v3531_v13 = vld [vmem:[%s4752_s1 + $0x5b4] ss:$24 sps:$4 sm:$0xff]   ;;  %v3526_v15 = vld [vmem:[%s4752_s1 + $0x8a8] ss:$24 sps:$4 sm:$0xff]  }
  0xbf   :  { %2000 = vmatpush1.bf16.msra.mxu1 %v3436_v16  ;;  %v3529_v16 = vld [vmem:[%s4752_s1 + $0x5b0] ss:$24 sps:$4 sm:$0xff]  }
  0xc0   :  { %2082 = vmatpush1.bf16.msra.mxu0 %v3439_v17  ;;  %2010 = vmatprep.subr.bf16.mxu1 %v3444_v18  ;;  %v3534_v17 = vld [vmem:[%s4752_s1 + $0x8dc] ss:$24 sps:$4 sm:$0xff]  }
  0xc1   :  { %2092 = vmatprep.subr.bf16.mxu0 %v3447_v19  ;;  %v3537_v18 = vld [vmem:[%s4752_s1 + $0x5e4] ss:$24 sps:$4 sm:$0xff]   ;;  %v3532_v19 = vld [vmem:[%s4752_s1 + $0x8d8] ss:$24 sps:$4 sm:$0xff]  }
  0xc2   :  { %2002 = vmatmul.mubr.bf16.vlgmr.msra.gmra.mrb[4].mxu1 %v3880_v7 }
  0xc3   :  { %2084 = vmatmul.mubr.bf16.vlgmr.msra.gmra.mrb[4].mxu0 %v3878_v6  ;;  %2011 = vmatpush1.bf16.msra.mxu1 %v3442_v20  ;;  %v3454_v6 = vld [vmem:[%s4752_s1 + $0x668] ss:$24 sps:$4 sm:$0xff]  }
  0xc4   :  { %2093 = vmatpush1.bf16.msra.mxu0 %v3445_v21  ;;  %2012 = vmatprep.subr.bf16.mxu1 %v3450_v22  ;;  %v3535_v20 = vld [vmem:[%s4752_s1 + $0x5e0] ss:$24 sps:$4 sm:$0xff]   ;;  %v3540_v21 = vld [vmem:[%s4752_s1 + $0x614] ss:$24 sps:$4 sm:$0xff]  }
  0xc5   :  { %2094 = vmatprep.subr.bf16.mxu0 %v3453_v23  ;;  %2042 = vmatprep.mubr.bf16.mxu1 %v3967_v34  ;;  %v3586_v22 = vld [vmem:[%s4754_s3 + $0x40] sm:$0xff]   ;;  %v3538_v23 = vld [vmem:[%s4752_s1 + $0x610] ss:$24 sps:$4 sm:$0xff]  }
  0xc6   :  { %2124 = vmatprep.mubr.bf16.mxu0 %v3820_v51  ;;  %v3460_v51 = vld [vmem:[%s4752_s1 + $0x698] ss:$24 sps:$4 sm:$0xff]  }
  0xc7   :  { %2013 = vmatpush1.bf16.msra.mxu1 %v3448_v24  ;;  %v3587_v24 = vld [vmem:[%s4754_s3] sm:$0xff]  }
  0xc8   :  { %2095 = vmatpush1.bf16.msra.mxu0 %v3451_v25  ;;  %2014 = vmatprep.subr.bf16.mxu1 %v3456_v47  ;;  %v3543_v25 = vld [vmem:[%s4752_s1 + $0x644] ss:$24 sps:$4 sm:$0xff]   ;;  %v3588_v47 = vld [vmem:[%s4754_s3 + $0x48] sm:$0xff]  }
  0xc9   :  { %2096 = vmatprep.subr.bf16.mxu0 %v3459_v26  ;;  %v3541_v26 = vld [vmem:[%s4752_s1 + $0x640] ss:$24 sps:$4 sm:$0xff]  }
  0xcb   :  { %2015 = vmatpush1.bf16.msra.mxu1 %v3454_v6  ;;  %v3589_v6 = vld [vmem:[%s4754_s3 + $0x8] sm:$0xff]  }
  0xcc   :  { %2097 = vmatpush1.bf16.msra.mxu0 %v3457_v27  ;;  %2016 = vmatprep.subr.bf16.mxu1 %v3462_v28  ;;  %v3546_v27 = vld [vmem:[%s4752_s1 + $0x674] ss:$24 sps:$4 sm:$0xff]   ;;  %v3544_v28 = vld [vmem:[%s4752_s1 + $0x670] ss:$24 sps:$4 sm:$0xff]  }
  0xcd   :  { %2098 = vmatprep.subr.bf16.mxu0 %v3465_v29  ;;  %v3591_v29 = vld [vmem:[%s4754_s3 + $0x10] sm:$0xff]  }
  0xcf   :  { %2017 = vmatpush1.bf16.msra.mxu1 %v3460_v51  ;;  %v3592_v51 = vld [vmem:[%s4754_s3 + $0x58] sm:$0xff]  }
  0xd0   :  { %2099 = vmatpush1.bf16.msra.mxu0 %v3463_v30  ;;  %2018 = vmatprep.subr.bf16.mxu1 %v3468_v31  ;;  %v3547_v30 = vld [vmem:[%s4752_s1 + $0x6a0] ss:$24 sps:$4 sm:$0xff]  }
  0xd1   :  { %2100 = vmatprep.subr.bf16.mxu0 %v3471_v32  ;;  %v3593_v31 = vld [vmem:[%s4754_s3 + $0x18] sm:$0xff]   ;;  %v3552_v32 = vld [vmem:[%s4752_s1 + $0x6d4] ss:$24 sps:$4 sm:$0xff]  }
  0xd3   :  { %2019 = vmatpush1.bf16.msra.mxu1 %v3466_v33  ;;  %v3594_v33 = vld [vmem:[%s4754_s3 + $0x60] sm:$0xff]  }
  0xd4   :  { %2101 = vmatpush1.bf16.msra.mxu0 %v3469_v35  ;;  %2020 = vmatprep.subr.bf16.mxu1 %v3474_v36  ;;  %v3550_v35 = vld [vmem:[%s4752_s1 + $0x6d0] ss:$24 sps:$4 sm:$0xff]   ;;  %v3595_v36 = vld [vmem:[%s4754_s3 + $0x20] sm:$0xff]  }
  0xd5   :  { %2102 = vmatprep.subr.bf16.mxu0 %v3477_v37  ;;  %v3555_v37 = vld [vmem:[%s4752_s1 + $0x704] ss:$24 sps:$4 sm:$0xff]  }
  0xd7   :  { %2021 = vmatpush1.bf16.msra.mxu1 %v3472_v38  ;;  %v3596_v38 = vld [vmem:[%s4754_s3 + $0x68] sm:$0xff]  }
  0xd8   :  { %2103 = vmatpush1.bf16.msra.mxu0 %v3475_v39  ;;  %2022 = vmatprep.subr.bf16.mxu1 %v3480_v40  ;;  %v3553_v39 = vld [vmem:[%s4752_s1 + $0x700] ss:$24 sps:$4 sm:$0xff]   ;;  %v3597_v40 = vld [vmem:[%s4754_s3 + $0x28] sm:$0xff]  }
  0xd9   :  { %2104 = vmatprep.subr.bf16.mxu0 %v3483_v41  ;;  %v3558_v41 = vld [vmem:[%s4752_s1 + $0x734] ss:$24 sps:$4 sm:$0xff]  }
  0xdb   :  { %2023 = vmatpush1.bf16.msra.mxu1 %v3478_v42  ;;  %v3598_v42 = vld [vmem:[%s4754_s3 + $0x70] sm:$0xff]  }
  0xdc   :  { %2105 = vmatpush1.bf16.msra.mxu0 %v3481_v43  ;;  %2024 = vmatprep.subr.bf16.mxu1 %v3486_v44 }
  0xdd   :  { %2106 = vmatprep.subr.bf16.mxu0 %v3489_v45  ;;  %v3556_v45 = vld [vmem:[%s4752_s1 + $0x730] ss:$24 sps:$4 sm:$0xff]  }
  0xdf   :  { %2025 = vmatpush1.bf16.msra.mxu1 %v3484_v46 }
  0xe0   :  { %2107 = vmatpush1.bf16.msra.mxu0 %v3487_v48  ;;  %2026 = vmatprep.subr.bf16.mxu1 %v3492_v49  ;;  %v3599_v48 = vld [vmem:[%s4754_s3 + $0x30] sm:$0xff]   ;;  %v3561_v49 = vld [vmem:[%s4752_s1 + $0x764] ss:$24 sps:$4 sm:$0xff]  }
  0xe1   :  { %2108 = vmatprep.subr.bf16.mxu0 %v3495_v50 }
  0xe3   :  { %2027 = vmatpush1.bf16.msra.mxu1 %v3490_v52  ;;  %v3600_v52 = vld [vmem:[%s4754_s3 + $0x78] sm:$0xff]  }
  0xe4   :  { %2109 = vmatpush1.bf16.msra.mxu0 %v3493_v53  ;;  %2028 = vmatprep.subr.bf16.mxu1 %v3498_v54  ;;  %v3559_v53 = vld [vmem:[%s4752_s1 + $0x760] ss:$24 sps:$4 sm:$0xff]  }
  0xe5   :  { %2110 = vmatprep.subr.bf16.mxu0 %v3501_v55  ;;  %v3601_v54 = vld [vmem:[%s4754_s3 + $0x38] sm:$0xff]   ;;  %v3564_v55 = vld [vmem:[%s4752_s1 + $0x794] ss:$24 sps:$4 sm:$0xff]  }
  0xe7   :  { %2029 = vmatpush1.bf16.msra.mxu1 %v3496_v56  ;;  %v3602_v56 = vld [vmem:[%s4754_s3 + $0xc0] sm:$0xff]  }
  0xe8   :  { %2111 = vmatpush1.bf16.msra.mxu0 %v3499_v57  ;;  %2030 = vmatprep.subr.bf16.mxu1 %v3504_v58  ;;  %v3562_v57 = vld [vmem:[%s4752_s1 + $0x790] ss:$24 sps:$4 sm:$0xff]   ;;  %v3567_v58 = vld [vmem:[%s4752_s1 + $0x7c4] ss:$24 sps:$4 sm:$0xff]  }
  0xe9   :  { %2112 = vmatprep.subr.bf16.mxu0 %v3507_v59  ;;  %v3565_v59 = vld [vmem:[%s4752_s1 + $0x7c0] ss:$24 sps:$4 sm:$0xff]  }
  0xeb   :  { %2031 = vmatpush1.bf16.msra.mxu1 %v3502_v60  ;;  %v3570_v60 = vld [vmem:[%s4752_s1 + $0x7f4] ss:$24 sps:$4 sm:$0xff]  }
  0xec   :  { %2113 = vmatpush1.bf16.msra.mxu0 %v3505_v61  ;;  %2032 = vmatprep.subr.bf16.mxu1 %v3510_v62  ;;  %v3568_v61 = vld [vmem:[%s4752_s1 + $0x7f0] ss:$24 sps:$4 sm:$0xff]   ;;  %v3573_v62 = vld [vmem:[%s4752_s1 + $0x824] ss:$24 sps:$4 sm:$0xff]  }
  0xed   :  { %2114 = vmatprep.subr.bf16.mxu0 %v3513_v63  ;;  %v3571_v63 = vld [vmem:[%s4752_s1 + $0x820] ss:$24 sps:$4 sm:$0xff]  }
  0xef   :  { %2033 = vmatpush1.bf16.msra.mxu1 %v3508_v0  ;;  %v3576_v0 = vld [vmem:[%s4752_s1 + $0x854] ss:$24 sps:$4 sm:$0xff]  }
  0xf0   :  { %2115 = vmatpush1.bf16.msra.mxu0 %v3511_v1  ;;  %2034 = vmatprep.subr.bf16.mxu1 %v3516_v2  ;;  %v3574_v1 = vld [vmem:[%s4752_s1 + $0x850] ss:$24 sps:$4 sm:$0xff]   ;;  %v3579_v2 = vld [vmem:[%s4752_s1 + $0x884] ss:$24 sps:$4 sm:$0xff]  }
  0xf1   :  { %2116 = vmatprep.subr.bf16.mxu0 %v3519_v3  ;;  %v3577_v3 = vld [vmem:[%s4752_s1 + $0x880] ss:$24 sps:$4 sm:$0xff]  }
  0xf3   :  { %2035 = vmatpush1.bf16.msra.mxu1 %v3514_v4  ;;  %v3582_v4 = vld [vmem:[%s4752_s1 + $0x8b4] ss:$24 sps:$4 sm:$0xff]  }
  0xf4   :  { %2117 = vmatpush1.bf16.msra.mxu0 %v3517_v5  ;;  %2036 = vmatprep.subr.bf16.mxu1 %v3522_v8  ;;  %v3580_v5 = vld [vmem:[%s4752_s1 + $0x8b0] ss:$24 sps:$4 sm:$0xff]   ;;  %v3585_v8 = vld [vmem:[%s4752_s1 + $0x8e4] ss:$24 sps:$4 sm:$0xff]  }
  0xf5   :  { %2118 = vmatprep.subr.bf16.mxu0 %v3525_v9  ;;  %v3583_v9 = vld [vmem:[%s4752_s1 + $0x8e0] ss:$24 sps:$4 sm:$0xff]  }
  0xf7   :  { %2037 = vmatpush1.bf16.msra.mxu1 %v3520_v10  ;;  %v314_v10 = vlaneseq }
  0xf8   :  { %2119 = vmatpush1.bf16.msra.mxu0 %v3523_v11  ;;  %2038 = vmatprep.subr.bf16.mxu1 %v3528_v12 }
  0xf9   :  { %2120 = vmatprep.subr.bf16.mxu0 %v3531_v13  ;;  %v4632_v11 = vshrl.u32 %v314_v10, 7  ;;  %v4638_v13 = vld [vmem:[%s4755_s2] sm:$0x3f] }
  0xfb   :  { %2039 = vmatpush1.bf16.msra.mxu1 %v3526_v15  ;;  %v316_v12 = vsub.s32 0, %v4632_v11  ;;  %v320_v15 = vsub.s32 1, %v4632_v11  ;;  %v332_v10 = vsub.s32 4, %v4632_v11 }
  0xfc   :  { %2121 = vmatpush1.bf16.msra.mxu0 %v3529_v16  ;;  %2040 = vmatprep.subr.bf16.mxu1 %v3534_v17 }
  0xfd   :  { %2122 = vmatprep.subr.bf16.mxu0 %v3537_v18  ;;  %v317_v16 = vrot.slane %v4638_v13, %v316_v12  ;;  %v321_v17 = vrot.slane %v4638_v13, %v320_v15  ;;  %v336_v12 = vsub.s32 5, %v4632_v11  ;;  %v333_v15 = vrot.slane %v4638_v13, %v332_v10 }
  0xff   :  { %2041 = vmatpush1.bf16.msra.mxu1 %v3532_v19 }
 0x100   :  { %2123 = vmatpush1.bf16.msra.mxu0 %v3535_v20  ;;  %3054 = vmatprep.subr.bf16.mxu1 %v3586_v22 }
 0x101   :  { %2133 = vmatprep.subr.bf16.mxu0 %v3540_v21 }
 0x102   :  { %2043 = vmatmul.mubr.bf16.vlgmr.msra.gmra.mrb[4].mxu1 %v4089_v14 }
 0x103   :  { %2125 = vmatmul.mubr.bf16.vlgmr.msra.gmra.mrb[4].mxu0 %v3880_v7  ;;  %3055 = vmatpush3.bf16.msra.mxu1 %v3587_v24  ;;  %v3590_v7 = vld [vmem:[%s4754_s3 + $0x50] sm:$0xff]  }
 0x104   :  { %2134 = vmatpush1.bf16.msra.mxu0 %v3538_v23  ;;  %2165 = vmatprep.mubr.bf16.mxu0 %v3967_v34  ;;  %v3549_v34 = vld [vmem:[%s4752_s1 + $0x6a4] ss:$24 sps:$4 sm:$0xff]  }
 0x105   :  { %2135 = vmatprep.subr.bf16.mxu0 %v3543_v25  ;;  %3056 = vmatprep.subr.bf16.mxu1 %v3588_v47 }
 0x107   :  { %3057 = vmatpush3.bf16.msra.mxu1 %v3589_v6  ;;  %v3603_v6 = vld [vmem:[%s4754_s3 + $0x80] sm:$0xff]  }
 0x108   :  { %2136 = vmatpush1.bf16.msra.mxu0 %v3541_v26  ;;  %3058 = vmatprep.subr.bf16.mxu1 %v3590_v7  ;;  %v3604_v7 = vld [vmem:[%s4754_s3 + $0xc8] sm:$0xff]  }
 0x109   :  { %2137 = vmatprep.subr.bf16.mxu0 %v3546_v27 }
 0x10b   :  { %3059 = vmatpush3.bf16.msra.mxu1 %v3591_v29  ;;  %v3606_v29 = vld [vmem:[%s4754_s3 + $0xd0] sm:$0xff]  }
 0x10c   :  { %2138 = vmatpush1.bf16.msra.mxu0 %v3544_v28  ;;  %3060 = vmatprep.subr.bf16.mxu1 %v3592_v51  ;;  %v3605_v28 = vld [vmem:[%s4754_s3 + $0x88] sm:$0xff]   ;;  %v3608_v51 = vld [vmem:[%s4754_s3 + $0xd8] sm:$0xff]  }
 0x10d   :  { %2139 = vmatprep.subr.bf16.mxu0 %v3549_v34  ;;  %v3607_v34 = vld [vmem:[%s4754_s3 + $0x90] sm:$0xff]  }
 0x10f   :  { %3061 = vmatpush3.bf16.msra.mxu1 %v3593_v31  ;;  %v3610_v31 = vld [vmem:[%s4754_s3 + $0xe0] sm:$0xff]  }
 0x110   :  { %2140 = vmatpush1.bf16.msra.mxu0 %v3547_v30  ;;  %3062 = vmatprep.subr.bf16.mxu1 %v3594_v33  ;;  %v3609_v30 = vld [vmem:[%s4754_s3 + $0x98] sm:$0xff]   ;;  %v3612_v33 = vld [vmem:[%s4754_s3 + $0xe8] sm:$0xff]  }
 0x111   :  { %2141 = vmatprep.subr.bf16.mxu0 %v3552_v32  ;;  %v3611_v32 = vld [vmem:[%s4754_s3 + $0xa0] sm:$0xff]  }
 0x113   :  { %3063 = vmatpush3.bf16.msra.mxu1 %v3595_v36  ;;  %v3614_v36 = vld [vmem:[%s4754_s3 + $0xf0] sm:$0xff]  }
 0x114   :  { %2142 = vmatpush1.bf16.msra.mxu0 %v3550_v35  ;;  %3064 = vmatprep.subr.bf16.mxu1 %v3596_v38  ;;  %v3613_v35 = vld [vmem:[%s4754_s3 + $0xa8] sm:$0xff]   ;;  %v3616_v38 = vld [vmem:[%s4754_s3 + $0xf8] sm:$0xff]  }
 0x115   :  { %2143 = vmatprep.subr.bf16.mxu0 %v3555_v37  ;;  %v4558_v43 = vpop.f32.mrb[0].mxu1  ;;  %v3615_v37 = vld [vmem:[%s4754_s3 + $0xb0] sm:$0xff]  }
 0x116   :  { %v4560_v44 = vpop.f32.mrb[1].mxu1  ;;  %v1840_v18 = vadd.f32 %v4558_v43, %v317_v16  ;;  %v337_v16 = vrot.slane %v4638_v13, %v336_v12 }
 0x117   :  { %v1843_v46 = vpop.f32.mrb[2].mxu1  ;;  %3065 = vmatpush3.bf16.msra.mxu1 %v3597_v40  ;;  %v3618_v40 = vld [vmem:[%s4754_s3 + $0x140] sm:$0xff]  }
 0x118   :  { %2144 = vmatpush1.bf16.msra.mxu0 %v3553_v39  ;;  %v1844_v50 = vpop.f32.mrb[3].mxu1  ;;  %3066 = vmatprep.subr.bf16.mxu1 %v3598_v42  ;;  %v3617_v39 = vld [vmem:[%s4754_s3 + $0xb8] sm:$0xff]   ;;  %v328_v42 = vsub.s32 3, %v4632_v11 }
 0x119   :  { %2145 = vmatprep.subr.bf16.mxu0 %v3558_v41  ;;  %v324_v41 = vsub.s32 2, %v4632_v11 }
 0x11b   :  { %3067 = vmatpush3.bf16.msra.mxu1 %v3599_v48  ;;  %v325_v43 = vrot.slane %v4638_v13, %v324_v41 }
 0x11c   :  { %2146 = vmatpush1.bf16.msra.mxu0 %v3556_v45  ;;  %3068 = vmatprep.subr.bf16.mxu1 %v3600_v52 }
 0x11d   :  { %2147 = vmatprep.subr.bf16.mxu0 %v3561_v49 }
 0x11f   :  { %3069 = vmatpush3.bf16.msra.mxu1 %v3601_v54 }
 0x120   :  { %2148 = vmatpush1.bf16.msra.mxu0 %v3559_v53  ;;  %3076 = vmatprep.subr.bf16.mxu1 %v3602_v56  ;;  %v3619_v56 = vld [vmem:[%s4754_s3 + $0x100] sm:$0xff]  }
 0x121   :  { %2149 = vmatprep.subr.bf16.mxu0 %v3564_v55 }
 0x124   :  { %2150 = vmatpush1.bf16.msra.mxu0 %v3562_v57 }
 0x125   :  { %2151 = vmatprep.subr.bf16.mxu0 %v3567_v58  ;;  %v3620_v58 = vld [vmem:[%s4754_s3 + $0x148] sm:$0xff]  }
 0x128   :  { %2152 = vmatpush1.bf16.msra.mxu0 %v3565_v59  ;;  %v3621_v59 = vld [vmem:[%s4754_s3 + $0x108] sm:$0xff]  }
 0x129   :  { %2153 = vmatprep.subr.bf16.mxu0 %v3570_v60  ;;  %v3622_v60 = vld [vmem:[%s4754_s3 + $0x150] sm:$0xff]  }
 0x12c   :  { %2154 = vmatpush1.bf16.msra.mxu0 %v3568_v61  ;;  %v3623_v61 = vld [vmem:[%s4754_s3 + $0x110] sm:$0xff]  }
 0x12d   :  { %2155 = vmatprep.subr.bf16.mxu0 %v3573_v62  ;;  %v3624_v62 = vld [vmem:[%s4754_s3 + $0x158] sm:$0xff]  }
 0x130   :  { %2156 = vmatpush1.bf16.msra.mxu0 %v3571_v63  ;;  %v3625_v63 = vld [vmem:[%s4754_s3 + $0x118] sm:$0xff]  }
 0x131   :  { %2157 = vmatprep.subr.bf16.mxu0 %v3576_v0  ;;  %v3626_v0 = vld [vmem:[%s4754_s3 + $0x160] sm:$0xff]  }
 0x134   :  { %2158 = vmatpush1.bf16.msra.mxu0 %v3574_v1  ;;  %v3627_v1 = vld [vmem:[%s4754_s3 + $0x120] sm:$0xff]  }
 0x135   :  { %2159 = vmatprep.subr.bf16.mxu0 %v3579_v2  ;;  %v3628_v2 = vld [vmem:[%s4754_s3 + $0x168] sm:$0xff]  }
 0x138   :  { %2160 = vmatpush1.bf16.msra.mxu0 %v3577_v3  ;;  %v3629_v3 = vld [vmem:[%s4754_s3 + $0x128] sm:$0xff]  }
 0x139   :  { %2161 = vmatprep.subr.bf16.mxu0 %v3582_v4  ;;  %v3630_v4 = vld [vmem:[%s4754_s3 + $0x170] sm:$0xff]  }
 0x13c   :  { %2162 = vmatpush1.bf16.msra.mxu0 %v3580_v5  ;;  %v3631_v5 = vld [vmem:[%s4754_s3 + $0x130] sm:$0xff]  }
 0x13d   :  { %2163 = vmatprep.subr.bf16.mxu0 %v3585_v8  ;;  %v3632_v8 = vld [vmem:[%s4754_s3 + $0x178] sm:$0xff]  }
 0x140   :  { %2164 = vmatpush1.bf16.msra.mxu0 %v3583_v9  ;;  %v3633_v9 = vld [vmem:[%s4754_s3 + $0x138] sm:$0xff]  }
 0x143   :  { %2166 = vmatmul.mubr.bf16.vlgmr.msra.gmra.mrb[4].mxu0 %v4089_v14  ;;  %v1842_v14 = vadd.f32 %v4560_v44, %v321_v17  ;;  %v329_v44 = vrot.slane %v4638_v13, %v328_v42  ;;  %v3005_v13 = vld [vmem:[%s4756_s4] ss:$0 sm:$0xff] }
 0x156   :  { %v1921_v19 = vpop.f32.mrb[0].mxu0 }
 0x157   :  { %v3121_v20 = vadd.f32 %v1921_v19, %v1840_v18  ;;  %v1923_v21 = vpop.f32.mrb[1].mxu0 }
 0x158   :  { %v3123_v22 = vadd.f32 %v1923_v21, %v1842_v14  ;;  %v1925_v23 = vpop.f32.mrb[2].mxu0 }
 0x159   :  { %v2174_v24 = vmax.f32 %v3121_v20, 0.0  ;;  %v1926_v25 = vpop.f32.mrb[3].mxu0 }
 0x15a   :  { %v2175_v47 = vmax.f32 %v3123_v22, 0.0 }
 0x15b   :  { %v2180_v27 = vpack.c.bf16 %v2174_v24, %v2174_v24 }
 0x15c   :  { %v2181_v26 = vpack.c.bf16 %v2175_v47, %v2175_v47 }
 0x15e   :  { %2609 = vmatprep.mubr.bf16.mxu1 %v2181_v26 }
 0x15f   :  { %2610 = vmatmul.mubr.bf16.vlgmr.msra.gmra.mrb[8].mxu1 %v2180_v27 }
 0x160   :  { %3077 = vmatpush3.bf16.msra.mxu1 %v3603_v6 }
 0x161   :  { %3078 = vmatprep.subr.bf16.mxu1 %v3604_v7 }
 0x164   :  { %3079 = vmatpush3.bf16.msra.mxu1 %v3605_v28 }
 0x165   :  { %3080 = vmatprep.subr.bf16.mxu1 %v3606_v29 }
 0x168   :  { %3081 = vmatpush3.bf16.msra.mxu1 %v3607_v34 }
 0x169   :  { %3082 = vmatprep.subr.bf16.mxu1 %v3608_v51 }
 0x16c   :  { %3083 = vmatpush3.bf16.msra.mxu1 %v3609_v30 }
 0x16d   :  { %3084 = vmatprep.subr.bf16.mxu1 %v3610_v31 }
 0x170   :  { %3085 = vmatpush3.bf16.msra.mxu1 %v3611_v32 }
 0x171   :  { %3086 = vmatprep.subr.bf16.mxu1 %v3612_v33 }
 0x174   :  { %3087 = vmatpush3.bf16.msra.mxu1 %v3613_v35 }
 0x175   :  { %3088 = vmatprep.subr.bf16.mxu1 %v3614_v36 }
 0x178   :  { %3089 = vmatpush3.bf16.msra.mxu1 %v3615_v37 }
 0x179   :  { %3090 = vmatprep.subr.bf16.mxu1 %v3616_v38 }
 0x17c   :  { %3091 = vmatpush3.bf16.msra.mxu1 %v3617_v39 }
 0x17d   :  { %3098 = vmatprep.subr.bf16.mxu1 %v3618_v40 }
 0x1d5   :  { %v2044_v45 = vpop.f32.mrb[4].mxu1 }
 0x1d6   :  { %v3124_v46 = vadd.f32 %v2044_v45, %v325_v43  ;;  %v2046_v48 = vpop.f32.mrb[5].mxu1 }
 0x1d7   :  { %v3125_v49 = vadd.f32 %v2046_v48, %v329_v44  ;;  %v2048_v50 = vpop.f32.mrb[6].mxu1 }
 0x1d8   :  { %v2176_v52 = vmax.f32 %v3124_v46, 0.0  ;;  %v2049_v53 = vpop.f32.mrb[7].mxu1 }
 0x1d9   :  { %v2177_v54 = vmax.f32 %v3125_v49, 0.0 }
 0x1da   :  { %v2182_v57 = vpack.c.bf16 %v2176_v52, %v2176_v52 }
 0x1db   :  { %v2183_v55 = vpack.c.bf16 %v2177_v54, %v2177_v54 }
 0x1dd   :  { %2649 = vmatprep.mubr.bf16.mxu1 %v2183_v55 }
 0x1de   :  { %2650 = vmatmul.mubr.bf16.vlgmr.msra.gmra.mrb[12].mxu1 %v2182_v57 }
 0x1df   :  { %3099 = vmatpush3.bf16.msra.mxu1 %v3619_v56 }
 0x1e0   :  { %3100 = vmatprep.subr.bf16.mxu1 %v3620_v58 }
 0x1e3   :  { %3101 = vmatpush3.bf16.msra.mxu1 %v3621_v59 }
 0x1e4   :  { %3102 = vmatprep.subr.bf16.mxu1 %v3622_v60 }
 0x1e7   :  { %3103 = vmatpush3.bf16.msra.mxu1 %v3623_v61 }
 0x1e8   :  { %3104 = vmatprep.subr.bf16.mxu1 %v3624_v62 }
 0x1eb   :  { %3105 = vmatpush3.bf16.msra.mxu1 %v3625_v63 }
 0x1ec   :  { %3106 = vmatprep.subr.bf16.mxu1 %v3626_v0 }
 0x1ef   :  { %3107 = vmatpush3.bf16.msra.mxu1 %v3627_v1 }
 0x1f0   :  { %3108 = vmatprep.subr.bf16.mxu1 %v3628_v2 }
 0x1f3   :  { %3109 = vmatpush3.bf16.msra.mxu1 %v3629_v3 }
 0x1f4   :  { %3110 = vmatprep.subr.bf16.mxu1 %v3630_v4 }
 0x1f7   :  { %3111 = vmatpush3.bf16.msra.mxu1 %v3631_v5 }
 0x1f8   :  { %3112 = vmatprep.subr.bf16.mxu1 %v3632_v8 }
 0x1fb   :  { %3113 = vmatpush3.bf16.msra.mxu1 %v3633_v9 }
 0x216   :  { %v2167_v17 = vpop.f32.mrb[4].mxu0 }
 0x217   :  { %v3126_v18 = vadd.f32 %v2167_v17, %v333_v15  ;;  %v2169_v14 = vpop.f32.mrb[5].mxu0 }
 0x218   :  { %v3127_v19 = vadd.f32 %v2169_v14, %v337_v16  ;;  %v2171_v20 = vpop.f32.mrb[6].mxu0 }
 0x219   :  { %v2178_v21 = vmax.f32 %v3126_v18, 0.0  ;;  %v2172_v22 = vpop.f32.mrb[7].mxu0 }
 0x21a   :  { %v2179_v23 = vmax.f32 %v3127_v19, 0.0 }
 0x21b   :  { %v2184_v25 = vpack.c.bf16 %v2178_v21, %v2178_v21 }
 0x21c   :  { %v2185_v24 = vpack.c.bf16 %v2179_v23, %v2179_v23 }
 0x21e   :  { %2689 = vmatprep.mubr.bf16.mxu1 %v2185_v24 }
 0x21f   :  { %2690 = vmatmul.mubr.bf16.vlgmr.msra.gmra.mrb[16].mxu1 %v2184_v25 }
 0x232   :  { %v3070_v47 = vpop.f32.mrb[8].mxu1 }
 0x233   :  { %v3071_v26 = vpop.f32.mrb[9].mxu1 }
 0x234   :  { %v3072_v6 = vadd.f32 %v3071_v26, %v3070_v47  ;;  %v3073_v11 = vpop.f32.mrb[10].mxu1 }
 0x235   :  { %v3074_v27 = vpop.f32.mrb[11].mxu1 }
 0x236   :  { %v2612_v29 = vadd.f32 %v3072_v6, %v3005_v13 }
 0x2b1   :  { %v3092_v7 = vpop.f32.mrb[12].mxu1 }
 0x2b2   :  { %v3093_v28 = vpop.f32.mrb[13].mxu1 }
 0x2b3   :  { %v3094_v34 = vadd.f32 %v3093_v28, %v3092_v7  ;;  %v3095_v51 = vpop.f32.mrb[14].mxu1 }
 0x2b4   :  { %v3096_v30 = vpop.f32.mrb[15].mxu1 }
 0x2b5   :  { %v2652_v31 = vadd.f32 %v3094_v34, %v2612_v29 }
 0x2f2   :  { %v3114_v32 = vpop.f32.mrb[16].mxu1 }
 0x2f3   :  { %v3115_v33 = vpop.f32.mrb[17].mxu1 }
 0x2f4   :  { %v3116_v35 = vadd.f32 %v3115_v33, %v3114_v32  ;;  %v3117_v36 = vpop.f32.mrb[18].mxu1 }
 0x2f5   :  { %v3118_v37 = vpop.f32.mrb[19].mxu1 }
 0x2f6   :  { %v2692_v38 = vadd.f32 %v3116_v35, %v2652_v31 }
 0x2f8   :  { %2697 = vmax.xlane.f32.xlu0 %v2692_v38 }
 0x385   :  { %v2698_v39 = vpop.xlane.xlu0 %2697 }
 0x386   :  { %v2699_v40 = vsub.f32 %v2692_v38, %v2698_v39 }
 0x388   :  { %v2700_v41 = vmul.f32 1.442695, %v2699_v40 }
 0x38a   :  { %3634 = vpow2.f32 %v2700_v41 }
 0x394   :  { %v3635_v42 = vpop.eup %3634 }
 0x395   :  { %2702 = vadd.xlane.f32.xlu0 %v3635_v42 }
 0x422   :  { %v2703_v43 = vpop.xlane.xlu0 %2702 }
 0x423   :  { %3636 = vrcp.f32 %v2703_v43 }
 0x42d   :  { %v3637_v44 = vpop.eup %3636 }
 0x42e   :  { %v2705_v45 = vmul.f32 %v3637_v44, %v3635_v42 }
 0x430   :  { %2706 = vst [vmem:[%s4757_s5] sm:$0xff] %v2705_v45 }

</bundles_post_ra>
